<compile_context>
chip_gen: v6e
topology: v6e:2x2x1
jax: 0.10.0
libtpu: 0.0.40
codegen_flags: <defaults>
</compile_context>

<pallas_src>
import jax
import jax.numpy as jnp
import numpy as np
from jax.experimental import pallas as pl
from jax.experimental.pallas import tpu as pltpu


def make_scconv_params(key, op_channel, *, group_num=4, alpha=0.5,
                       squeeze_radio=2, group_size=2, group_kernel_size=3):
    """Deterministic synthetic parameters matching the PyTorch module shapes."""
    up_channel = int(alpha * op_channel)
    low_channel = op_channel - up_channel
    usq = up_channel // squeeze_radio
    lsq = low_channel // squeeze_radio
    ks = group_kernel_size
    keys = jax.random.split(key, 8)
    params = dict(
        gamma=jax.random.uniform(keys[0], (op_channel,), jnp.float32, 0.5, 1.5),
        beta=0.1 * jax.random.normal(keys[1], (op_channel,), jnp.float32),
        w_sq1=0.3 * jax.random.normal(keys[2], (usq, up_channel), jnp.float32),
        w_sq2=0.3 * jax.random.normal(keys[3], (lsq, low_channel), jnp.float32),
        w_gwc=0.3 * jax.random.normal(
            keys[4], (op_channel, usq // group_size, ks, ks), jnp.float32),
        b_gwc=0.1 * jax.random.normal(keys[5], (op_channel,), jnp.float32),
        w_pwc1=0.3 * jax.random.normal(keys[6], (op_channel, usq), jnp.float32),
        w_pwc2=0.3 * jax.random.normal(keys[7], (op_channel - lsq, lsq), jnp.float32),
    )
    meta = dict(up_channel=up_channel, low_channel=low_channel, usq=usq, lsq=lsq,
                group_num=group_num, group_size=group_size, ks=ks)
    return params, meta


def _pick_batch_tile(N, HW, lane_cap=4096):
    """Largest batch tile with Bt*HW a multiple of 128 and within the lane cap,
    preferring >= 2 grid steps (megacore sharding on v7x)."""
    cands = [d for d in range(1, N + 1)
             if N % d == 0 and (d * HW) % 128 == 0 and d * HW <= lane_cap]
    if not cands:
        cands = [d for d in range(1, N + 1)
                 if N % d == 0 and (d * HW) % 128 == 0]
    if not cands:
        # Whole batch in one step: block == full array extent is always legal.
        cands = [N]
    two_step = [d for d in cands if N // d >= 2]
    return max(two_step) if two_step else max(cands)


def scconv_pallas(x, params, meta, *, gate_threshold=0.5, gn_eps=1e-5,
                  matmul_dtype=jnp.bfloat16, batch_tile=None):
    N, C, H, W = x.shape
    HW = H * W
    up_channel = meta["up_channel"]
    usq, lsq = meta["usq"], meta["lsq"]
    G = meta["group_num"]
    gs = meta["group_size"]
    ks = meta["ks"]
    assert C % G == 0 and C % 2 == 0
    cpg = C // G                # channels per GroupNorm group
    opg = C // gs               # GWC output channels per conv group
    ipg = usq // gs             # GWC input channels per conv group
    cdt = matmul_dtype

    if batch_tile is None:
        batch_tile = _pick_batch_tile(N, HW)
    Bt = batch_tile
    assert N % Bt == 0
    L = Bt * HW
    usq_p = ((usq + 15) // 16) * 16   # pad squeezed up-channels to bf16 tile (16)
    n_taps = ks * ks

    # --- parameter preprocessing (numpy / JAX glue, runs once) ---
    gamma = params["gamma"].reshape(C, 1).astype(jnp.float32)
    beta = params["beta"].reshape(C, 1).astype(jnp.float32)
    wgam = (gamma / jnp.sum(gamma)).astype(jnp.float32)      # hoisted w_gamma

    # Block-diag channel -> group-average matrix (applied to per-channel means).
    Ag = np.zeros((C, C), np.float32)
    for g in range(G):
        Ag[g * cpg:(g + 1) * cpg, g * cpg:(g + 1) * cpg] = 1.0 / cpg

    # Per-image lane pooling (spatial mean, 1/HW folded in) / broadcast matrices.
    pool = np.zeros((L, Bt), np.float32)
    poolT = np.zeros((Bt, L), np.float32)
    for b in range(Bt):
        pool[b * HW:(b + 1) * HW, b] = 1.0 / HW
        poolT[b, b * HW:(b + 1) * HW] = 1.0

    # 3x3 validity masks (zero padding), precomputed at (9, 1, L).
    lane = np.arange(L)
    pos = lane % HW
    yy = pos // W
    xx = pos % W
    masks = np.zeros((n_taps, 1, L), np.float32)
    t = 0
    for dy in (-1, 0, 1):
        for dx in (-1, 0, 1):
            masks[t, 0, :] = ((yy + dy >= 0) & (yy + dy < H) &
                              (xx + dx >= 0) & (xx + dx < W)).astype(np.float32)
            t += 1

    # Squeeze 1x1 convs extended to full-channel input; squeeze1 padded to usq_p.
    wsq1e = np.zeros((usq_p, C), np.float32)
    wsq1e[:usq, :up_channel] = np.asarray(params["w_sq1"])
    wsq2e = np.zeros((lsq, C), np.float32)
    wsq2e[:, up_channel:] = np.asarray(params["w_sq2"])

    # Dense-expand grouped 3x3 weights; fold PWC1 into the centre tap so the
    # fused GWC+PWC1 contraction has exactly 9 tap blocks.
    w_gwc_np = np.asarray(params["w_gwc"])                   # (C, ipg, ks, ks)
    w_gwc_dense = np.zeros((C, usq, ks, ks), np.float32)
    for o in range(C):
        g = o // opg
        w_gwc_dense[o, g * ipg:(g + 1) * ipg] = w_gwc_np[o]
    w_pwc1_np = np.asarray(params["w_pwc1"])                 # (C, usq)
    blocks = []
    for ky in range(ks):
        for kx in range(ks):
            blk = w_gwc_dense[:, :, ky, kx].copy()
            if ky == ks // 2 and kx == ks // 2:
                blk = blk + w_pwc1_np                        # PWC1 folded in
            blocks.append(np.pad(blk, ((0, 0), (0, usq_p - usq))))
    w1big = np.concatenate(blocks, axis=1)                   # (C, 9*usq_p)

    b_gwc = params["b_gwc"].reshape(C, 1).astype(jnp.float32)
    # Y2 = cat([PWC2(low_sq), low_sq]) is linear in low_sq -> single matmul.
    w_y2 = np.concatenate([np.asarray(params["w_pwc2"]),
                           np.eye(lsq, dtype=np.float32)], axis=0)   # (C, lsq)

    ag_j = jnp.asarray(Ag)
    pool_j = jnp.asarray(pool)
    poolT_j = jnp.asarray(poolT)
    masks_j = jnp.asarray(masks)
    wsq1_j = jnp.asarray(wsq1e).astype(cdt)
    wsq2_j = jnp.asarray(wsq2e).astype(cdt)
    w1big_j = jnp.asarray(w1big).astype(cdt)
    wy2_j = jnp.asarray(w_y2).astype(cdt)

    # --- the Pallas kernel (one batch tile of Bt images per grid step) ---
    def kernel(x_ref, gamma_ref, beta_ref, wgam_ref, ag_ref, pool_ref, poolt_ref,
               wsq1_ref, wsq2_ref, w1big_ref, bgwc_ref, wy2_ref, masks_ref,
               out_ref, stacked_ref):
        xb = x_ref[...]                                    # (C, L) f32

        def bcast_cols(v):
            # (rows, Bt) -> (rows, L): per-image lane broadcast.
            if Bt == 1:
                return jnp.broadcast_to(v, (v.shape[0], L))
            return jnp.dot(v, poolt_ref[...], preferred_element_type=jnp.float32)

        # ---- GroupNorm folded into per-(channel, image) affine coefficients ----
        m_c = jnp.dot(xb, pool_ref[...], preferred_element_type=jnp.float32)        # (C, Bt) E[x]
        m2_c = jnp.dot(xb * xb, pool_ref[...], preferred_element_type=jnp.float32)  # (C, Bt) E[x^2]
        mean = jnp.dot(ag_ref[...], m_c, preferred_element_type=jnp.float32)        # group mean
        ex2 = jnp.dot(ag_ref[...], m2_c, preferred_element_type=jnp.float32)
        var = jnp.maximum(ex2 - mean * mean, 0.0)                                    # guard cancel
        inv = jax.lax.rsqrt(var + gn_eps)                                            # (C, Bt)
        gw = gamma_ref[...] * wgam_ref[...]                                          # (C, 1)
        a_c = gw * inv                                                               # (C, Bt)
        b_c = beta_ref[...] * wgam_ref[...] - mean * a_c                             # (C, Bt)
        ab_full = bcast_cols(jnp.concatenate([a_c, b_c], axis=0))                    # (2C, L)

        # ---- SRU gating + cross reconstruct (f32) ----
        rw = jax.nn.sigmoid(ab_full[:C] * xb + ab_full[C:])
        rx = rw * xb
        hi = rw > gate_threshold
        # cat([x11+x22, x12+x21]) == w1*x + roll(w2*x, C//2) along channels
        y = jnp.where(hi, xb, rx) + pltpu.roll(
            jnp.where(hi, 0.0, rx), shift=C // 2, axis=0)

        # ---- CRU: squeeze 1x1 convs (bf16 operands, f32 accumulation) ----
        yc = y.astype(cdt)
        up_sq = jnp.dot(wsq1_ref[...], yc, preferred_element_type=jnp.float32)   # (usq_p, L)
        low_sq = jnp.dot(wsq2_ref[...], yc, preferred_element_type=jnp.float32)  # (lsq, L)

        # ---- fused GWC(3x3 grouped) + PWC1: 9 taps staged in bf16 scratch ----
        t = 0
        for dy in (-1, 0, 1):
            for dx in (-1, 0, 1):
                if dy == 0 and dx == 0:
                    tap = up_sq                       # centre tap: no roll, no mask
                else:
                    shift = dy * W + dx
                    tap = pltpu.roll(up_sq, shift=(-shift) % L, axis=1) * masks_ref[t]
                stacked_ref[t * usq_p:(t + 1) * usq_p, :] = tap.astype(cdt)
                t += 1
        Y1 = jnp.dot(w1big_ref[...], stacked_ref[...],
                     preferred_element_type=jnp.float32) + bgwc_ref[...]          # (C, L)
        Y2 = jnp.dot(wy2_ref[...], low_sq.astype(cdt),
                     preferred_element_type=jnp.float32)                          # (C, L)

        # ---- softmax(adaptive_avg_pool) channel gating, per image ----
        p1 = jnp.dot(Y1, pool_ref[...], preferred_element_type=jnp.float32)       # (C, Bt)
        p2 = jnp.dot(Y2, pool_ref[...], preferred_element_type=jnp.float32)       # (C, Bt)
        pooled = jnp.concatenate([p1, p2], axis=0)                                # (2C, Bt)
        mx = jnp.max(pooled, axis=0, keepdims=True)
        e = jnp.exp(pooled - mx)
        s = e / jnp.sum(e, axis=0, keepdims=True)                                 # exact, tiny
        s1f = bcast_cols(s[:C])                                                   # (C, L)
        s2f = bcast_cols(s[C:])
        out_ref[...] = s1f * Y1 + s2f * Y2

    def full_spec(shape):
        nd = len(shape)
        return pl.BlockSpec(shape, lambda n, _nd=nd: (0,) * _nd)

    # Channels on sublanes, (batch tile * HW) on lanes.
    x_cl = jnp.transpose(x, (1, 0, 2, 3)).reshape(C, N * HW).astype(jnp.float32)

    out = pl.pallas_call(
        kernel,
        out_shape=jax.ShapeDtypeStruct((C, N * HW), jnp.float32),
        grid=(N // Bt,),
        in_specs=[
            pl.BlockSpec((C, L), lambda n: (0, n)),     # x (batch tile on lanes)
            full_spec((C, 1)),                          # gamma
            full_spec((C, 1)),                          # beta
            full_spec((C, 1)),                          # w_gamma (hoisted)
            full_spec((C, C)),                          # block-diag group average
            full_spec((L, Bt)),                         # per-image spatial mean
            full_spec((Bt, L)),                         # per-image lane broadcast
            full_spec((usq_p, C)),                      # squeeze1 (extended+padded)
            full_spec((lsq, C)),                        # squeeze2 (extended)
            full_spec((C, n_taps * usq_p)),             # fused GWC taps (+PWC1 centre)
            full_spec((C, 1)),                          # GWC bias
            full_spec((C, lsq)),                        # [PWC2; I]
            full_spec((n_taps, 1, L)),                  # 3x3 validity masks
        ],
        out_specs=pl.BlockSpec((C, L), lambda n: (0, n)),
        scratch_shapes=[pltpu.VMEM((n_taps * usq_p, L), cdt)],
        compiler_params=pltpu.CompilerParams(
            dimension_semantics=("parallel",),
            # keep headroom for v7x's 64 MiB VMEM; harmless on v5e/v6e
            vmem_limit_bytes=48 * 1024 * 1024),
    )(x_cl, gamma, beta, wgam, ag_j, pool_j, poolT_j,
      wsq1_j, wsq2_j, w1big_j, b_gwc, wy2_j, masks_j)

    return out.reshape(C, N, H, W).transpose(1, 0, 2, 3)


def scconv_reference(x, params, meta, *, gate_threshold=0.5, gn_eps=1e-5):
    """Pure-JAX reference mirroring the PyTorch forward (NCHW)."""
    N, C, H, W = x.shape
    G = meta["group_num"]
    up_channel = meta["up_channel"]
    gamma, beta = params["gamma"], params["beta"]

    xr = x.reshape(N, G, -1)
    mean = xr.mean(axis=2, keepdims=True)
    var = ((xr - mean) ** 2).mean(axis=2, keepdims=True)
    xn = ((xr - mean) / jnp.sqrt(var + gn_eps)).reshape(N, C, H, W)
    gn_x = xn * gamma.reshape(1, C, 1, 1) + beta.reshape(1, C, 1, 1)
    w_gamma = (gamma / gamma.sum()).reshape(1, C, 1, 1)
    rw = jax.nn.sigmoid(gn_x * w_gamma)
    w1 = jnp.where(rw > gate_threshold, 1.0, rw)
    w2 = jnp.where(rw > gate_threshold, 0.0, rw)
    x1, x2 = w1 * x, w2 * x
    half = C // 2
    y = jnp.concatenate(
        [x1[:, :half] + x2[:, half:], x1[:, half:] + x2[:, :half]], axis=1)

    up, low = y[:, :up_channel], y[:, up_channel:]
    up_s = jnp.einsum("oi,nihw->nohw", params["w_sq1"], up)
    low_s = jnp.einsum("oi,nihw->nohw", params["w_sq2"], low)
    gwc = jax.lax.conv_general_dilated(
        up_s, params["w_gwc"], window_strides=(1, 1), padding="SAME",
        dimension_numbers=("NCHW", "OIHW", "NCHW"),
        feature_group_count=meta["group_size"],
    ) + params["b_gwc"].reshape(1, -1, 1, 1)
    Y1 = gwc + jnp.einsum("oi,nihw->nohw", params["w_pwc1"], up_s)
    Y2 = jnp.concatenate(
        [jnp.einsum("oi,nihw->nohw", params["w_pwc2"], low_s), low_s], axis=1)
    out = jnp.concatenate([Y1, Y2], axis=1)
    sm = jax.nn.softmax(out.mean(axis=(2, 3), keepdims=True), axis=1)
    out = sm * out
    return out[:, :C] + out[:, C:]


if __name__ == "__main__":
    key = jax.random.PRNGKey(0)
    kx, kp = jax.random.split(key)
    op_channel = 8
    x = jax.random.normal(kx, (2, op_channel, 16, 16), jnp.float32)
    params, meta = make_scconv_params(kp, op_channel)

    out = scconv_pallas(x, params, meta)
    out = jax.block_until_ready(out)

    ref = scconv_reference(x, params, meta)
    # bf16 matmul operands (f32 accumulation) -> loosened tolerance vs f32 ref.
    np.testing.assert_allclose(np.asarray(out), np.asarray(ref),
                               rtol=5e-2, atol=1e-2)
    print("KERNEL_OK")
</pallas_src>

<mosaic_0001>
module attributes {stable_mosaic.version = 11 : i64} {
  func.func @kernel(%arg0: i32, %arg1: memref<8x256xf32, #tpu.memory_space<vmem>>, %arg2: memref<8x1xf32, #tpu.memory_space<vmem>>, %arg3: memref<8x1xf32, #tpu.memory_space<vmem>>, %arg4: memref<8x1xf32, #tpu.memory_space<vmem>>, %arg5: memref<8x8xf32, #tpu.memory_space<vmem>>, %arg6: memref<256x1xf32, #tpu.memory_space<vmem>>, %arg7: memref<1x256xf32, #tpu.memory_space<vmem>>, %arg8: memref<16x8xbf16, #tpu.memory_space<vmem>>, %arg9: memref<2x8xbf16, #tpu.memory_space<vmem>>, %arg10: memref<8x144xbf16, #tpu.memory_space<vmem>>, %arg11: memref<8x1xf32, #tpu.memory_space<vmem>>, %arg12: memref<8x2xbf16, #tpu.memory_space<vmem>>, %arg13: memref<9x1x256xf32, #tpu.memory_space<vmem>>, %arg14: memref<8x256xf32, #tpu.memory_space<vmem>>, %arg15: memref<144x256xbf16, #tpu.memory_space<vmem>>) attributes {dimension_semantics = [#tpu.dimension_semantics<parallel>], iteration_bounds = array<i64: 2>, scalar_prefetch = 0 : i64, scratch_operands = 1 : i64, tpu.core_type = #tpu.core_type<tc>, window_params = [{transform_indices = @transform_0, window_bounds = array<i64: 8, 256>}, {pipeline_mode = #tpu.pipeline_mode<synchronous>, transform_indices = @transform_1, window_bounds = array<i64: 8, 1>}, {pipeline_mode = #tpu.pipeline_mode<synchronous>, transform_indices = @transform_2, window_bounds = array<i64: 8, 1>}, {pipeline_mode = #tpu.pipeline_mode<synchronous>, transform_indices = @transform_3, window_bounds = array<i64: 8, 1>}, {pipeline_mode = #tpu.pipeline_mode<synchronous>, transform_indices = @transform_4, window_bounds = array<i64: 8, 8>}, {pipeline_mode = #tpu.pipeline_mode<synchronous>, transform_indices = @transform_5, window_bounds = array<i64: 256, 1>}, {pipeline_mode = #tpu.pipeline_mode<synchronous>, transform_indices = @transform_6, window_bounds = array<i64: 1, 256>}, {pipeline_mode = #tpu.pipeline_mode<synchronous>, transform_indices = @transform_7, window_bounds = array<i64: 16, 8>}, {pipeline_mode = #tpu.pipeline_mode<synchronous>, transform_indices = @transform_8, window_bounds = array<i64: 2, 8>}, {pipeline_mode = #tpu.pipeline_mode<synchronous>, transform_indices = @transform_9, window_bounds = array<i64: 8, 144>}, {pipeline_mode = #tpu.pipeline_mode<synchronous>, transform_indices = @transform_10, window_bounds = array<i64: 8, 1>}, {pipeline_mode = #tpu.pipeline_mode<synchronous>, transform_indices = @transform_11, window_bounds = array<i64: 8, 2>}, {pipeline_mode = #tpu.pipeline_mode<synchronous>, transform_indices = @transform_12, window_bounds = array<i64: 9, 1, 256>}, {transform_indices = @transform_13, window_bounds = array<i64: 8, 256>}]} {
    %c0 = arith.constant 0 : index
    %c0_0 = arith.constant 0 : index
    %0 = vector.load %arg1[%c0, %c0_0] : memref<8x256xf32, #tpu.memory_space<vmem>>, vector<8x256xf32>
    %c0_1 = arith.constant 0 : index
    %c0_2 = arith.constant 0 : index
    %1 = vector.load %arg6[%c0_1, %c0_2] : memref<256x1xf32, #tpu.memory_space<vmem>>, vector<256x1xf32>
    %cst = arith.constant dense<0.000000e+00> : vector<8x1xf32>
    %2 = tpu.matmul %0, %1, %cst {dimension_numbers = #tpu.dot_dimension_numbers<[1], [0], [0], [1], [0, 0, 1, 1], [], []>} : vector<8x256xf32>, vector<256x1xf32>, vector<8x1xf32> -> vector<8x1xf32>
    %3 = arith.mulf %0, %0 : vector<8x256xf32>
    %c0_3 = arith.constant 0 : index
    %c0_4 = arith.constant 0 : index
    %4 = vector.load %arg6[%c0_3, %c0_4] : memref<256x1xf32, #tpu.memory_space<vmem>>, vector<256x1xf32>
    %cst_5 = arith.constant dense<0.000000e+00> : vector<8x1xf32>
    %5 = tpu.matmul %3, %4, %cst_5 {dimension_numbers = #tpu.dot_dimension_numbers<[1], [0], [0], [1], [0, 0, 1, 1], [], []>} : vector<8x256xf32>, vector<256x1xf32>, vector<8x1xf32> -> vector<8x1xf32>
    %c0_6 = arith.constant 0 : index
    %c0_7 = arith.constant 0 : index
    %6 = vector.load %arg5[%c0_6, %c0_7] : memref<8x8xf32, #tpu.memory_space<vmem>>, vector<8x8xf32>
    %cst_8 = arith.constant dense<0.000000e+00> : vector<8x1xf32>
    %7 = tpu.matmul %6, %2, %cst_8 {dimension_numbers = #tpu.dot_dimension_numbers<[1], [0], [0], [1], [0, 0, 1, 1], [], []>} : vector<8x8xf32>, vector<8x1xf32>, vector<8x1xf32> -> vector<8x1xf32>
    %c0_9 = arith.constant 0 : index
    %c0_10 = arith.constant 0 : index
    %8 = vector.load %arg5[%c0_9, %c0_10] : memref<8x8xf32, #tpu.memory_space<vmem>>, vector<8x8xf32>
    %cst_11 = arith.constant dense<0.000000e+00> : vector<8x1xf32>
    %9 = tpu.matmul %8, %5, %cst_11 {dimension_numbers = #tpu.dot_dimension_numbers<[1], [0], [0], [1], [0, 0, 1, 1], [], []>} : vector<8x8xf32>, vector<8x1xf32>, vector<8x1xf32> -> vector<8x1xf32>
    %10 = arith.mulf %7, %7 : vector<8x1xf32>
    %11 = arith.subf %9, %10 : vector<8x1xf32>
    %cst_12 = arith.constant 0.000000e+00 : f32
    %12 = vector.broadcast %cst_12 : f32 to vector<8x1xf32>
    %13 = arith.maximumf %11, %12 : vector<8x1xf32>
    %cst_13 = arith.constant 9.99999974E-6 : f32
    %14 = vector.broadcast %cst_13 : f32 to vector<8x1xf32>
    %15 = arith.addf %13, %14 : vector<8x1xf32>
    %16 = math.rsqrt %15 : vector<8x1xf32>
    %c0_14 = arith.constant 0 : index
    %c0_15 = arith.constant 0 : index
    %17 = vector.load %arg2[%c0_14, %c0_15] : memref<8x1xf32, #tpu.memory_space<vmem>>, vector<8x1xf32>
    %c0_16 = arith.constant 0 : index
    %c0_17 = arith.constant 0 : index
    %18 = vector.load %arg4[%c0_16, %c0_17] : memref<8x1xf32, #tpu.memory_space<vmem>>, vector<8x1xf32>
    %19 = arith.mulf %17, %18 : vector<8x1xf32>
    %20 = arith.mulf %19, %16 : vector<8x1xf32>
    %c0_18 = arith.constant 0 : index
    %c0_19 = arith.constant 0 : index
    %21 = vector.load %arg3[%c0_18, %c0_19] : memref<8x1xf32, #tpu.memory_space<vmem>>, vector<8x1xf32>
    %c0_20 = arith.constant 0 : index
    %c0_21 = arith.constant 0 : index
    %22 = vector.load %arg4[%c0_20, %c0_21] : memref<8x1xf32, #tpu.memory_space<vmem>>, vector<8x1xf32>
    %23 = arith.mulf %21, %22 : vector<8x1xf32>
    %24 = arith.mulf %7, %20 : vector<8x1xf32>
    %25 = arith.subf %23, %24 : vector<8x1xf32>
    %26 = tpu.concatenate %20, %25 in 0 : vector<8x1xf32>, vector<8x1xf32> -> vector<16x1xf32>
    %27 = vector.shape_cast %26 : vector<16x1xf32> to vector<16x1xf32>
    %28 = vector.broadcast %27 : vector<16x1xf32> to vector<16x256xf32>
    %29 = vector.extract_strided_slice %28 {offsets = [0, 0], sizes = [8, 256], strides = [1, 1]} : vector<16x256xf32> to vector<8x256xf32>
    %30 = arith.mulf %29, %0 : vector<8x256xf32>
    %31 = vector.extract_strided_slice %28 {offsets = [8, 0], sizes = [8, 256], strides = [1, 1]} : vector<16x256xf32> to vector<8x256xf32>
    %32 = arith.addf %30, %31 : vector<8x256xf32>
    %33 = arith.negf %32 : vector<8x256xf32>
    %34 = math.exp %33 : vector<8x256xf32>
    %cst_22 = arith.constant 1.000000e+00 : f32
    %35 = vector.broadcast %cst_22 : f32 to vector<8x256xf32>
    %36 = arith.addf %35, %34 : vector<8x256xf32>
    %37 = arith.divf %35, %36 : vector<8x256xf32>
    %38 = arith.mulf %37, %0 : vector<8x256xf32>
    %cst_23 = arith.constant 5.000000e-01 : f32
    %39 = vector.broadcast %cst_23 : f32 to vector<8x256xf32>
    %40 = arith.cmpf ogt, %37, %39 : vector<8x256xf32>
    %41 = arith.select %40, %0, %38 : vector<8x256xi1>, vector<8x256xf32>
    %cst_24 = arith.constant 0.000000e+00 : f32
    %42 = vector.broadcast %cst_24 : f32 to vector<8x256xf32>
    %43 = arith.select %40, %42, %38 : vector<8x256xi1>, vector<8x256xf32>
    %c4_i32 = arith.constant 4 : i32
    %44 = tpu.dynamic_rotate %43 by %c4_i32 dim 0 : vector<8x256xf32>, i32 -> vector<8x256xf32>
    %45 = arith.addf %41, %44 : vector<8x256xf32>
    %46 = arith.truncf %45 : vector<8x256xf32> to vector<8x256xbf16>
    %c0_25 = arith.constant 0 : index
    %c0_26 = arith.constant 0 : index
    %47 = vector.load %arg8[%c0_25, %c0_26] : memref<16x8xbf16, #tpu.memory_space<vmem>>, vector<16x8xbf16>
    %cst_27 = arith.constant dense<0.000000e+00> : vector<16x256xf32>
    %48 = tpu.matmul %47, %46, %cst_27 {dimension_numbers = #tpu.dot_dimension_numbers<[1], [0], [0], [1], [0, 0, 1, 1], [], []>} : vector<16x8xbf16>, vector<8x256xbf16>, vector<16x256xf32> -> vector<16x256xf32>
    %c0_28 = arith.constant 0 : index
    %c0_29 = arith.constant 0 : index
    %49 = vector.load %arg9[%c0_28, %c0_29] : memref<2x8xbf16, #tpu.memory_space<vmem>>, vector<2x8xbf16>
    %cst_30 = arith.constant dense<0.000000e+00> : vector<2x256xf32>
    %50 = tpu.matmul %49, %46, %cst_30 {dimension_numbers = #tpu.dot_dimension_numbers<[1], [0], [0], [1], [0, 0, 1, 1], [], []>} : vector<2x8xbf16>, vector<8x256xbf16>, vector<2x256xf32> -> vector<2x256xf32>
    %c17_i32 = arith.constant 17 : i32
    %51 = tpu.dynamic_rotate %48 by %c17_i32 dim 1 : vector<16x256xf32>, i32 -> vector<16x256xf32>
    %c0_31 = arith.constant 0 : index
    %c0_32 = arith.constant 0 : index
    %c0_33 = arith.constant 0 : index
    %52 = vector.load %arg13[%c0_31, %c0_32, %c0_33] : memref<9x1x256xf32, #tpu.memory_space<vmem>>, vector<1x1x256xf32>
    %53 = vector.shape_cast %52 : vector<1x1x256xf32> to vector<1x256xf32>
    %54 = vector.broadcast %53 : vector<1x256xf32> to vector<16x256xf32>
    %55 = arith.mulf %51, %54 : vector<16x256xf32>
    %56 = arith.truncf %55 : vector<16x256xf32> to vector<16x256xbf16>
    %c0_34 = arith.constant 0 : index
    %c0_35 = arith.constant 0 : index
    %57 = vector.load %arg15[%c0_34, %c0_35] : memref<144x256xbf16, #tpu.memory_space<vmem>>, vector<16x256xbf16>
    tpu.vector_store %arg15[%c0_34, %c0_35], %56 {strides = array<i32>} : memref<144x256xbf16, #tpu.memory_space<vmem>>, vector<16x256xbf16>,
    %c16_i32 = arith.constant 16 : i32
    %58 = tpu.dynamic_rotate %48 by %c16_i32 dim 1 : vector<16x256xf32>, i32 -> vector<16x256xf32>
    %c1 = arith.constant 1 : index
    %c0_36 = arith.constant 0 : index
    %c0_37 = arith.constant 0 : index
    %59 = vector.load %arg13[%c1, %c0_36, %c0_37] : memref<9x1x256xf32, #tpu.memory_space<vmem>>, vector<1x1x256xf32>
    %60 = vector.shape_cast %59 : vector<1x1x256xf32> to vector<1x256xf32>
    %61 = vector.broadcast %60 : vector<1x256xf32> to vector<16x256xf32>
    %62 = arith.mulf %58, %61 : vector<16x256xf32>
    %63 = arith.truncf %62 : vector<16x256xf32> to vector<16x256xbf16>
    %c16 = arith.constant 16 : index
    %c0_38 = arith.constant 0 : index
    %64 = vector.load %arg15[%c16, %c0_38] : memref<144x256xbf16, #tpu.memory_space<vmem>>, vector<16x256xbf16>
    tpu.vector_store %arg15[%c16, %c0_38], %63 {strides = array<i32>} : memref<144x256xbf16, #tpu.memory_space<vmem>>, vector<16x256xbf16>,
    %c15_i32 = arith.constant 15 : i32
    %65 = tpu.dynamic_rotate %48 by %c15_i32 dim 1 : vector<16x256xf32>, i32 -> vector<16x256xf32>
    %c2 = arith.constant 2 : index
    %c0_39 = arith.constant 0 : index
    %c0_40 = arith.constant 0 : index
    %66 = vector.load %arg13[%c2, %c0_39, %c0_40] : memref<9x1x256xf32, #tpu.memory_space<vmem>>, vector<1x1x256xf32>
    %67 = vector.shape_cast %66 : vector<1x1x256xf32> to vector<1x256xf32>
    %68 = vector.broadcast %67 : vector<1x256xf32> to vector<16x256xf32>
    %69 = arith.mulf %65, %68 : vector<16x256xf32>
    %70 = arith.truncf %69 : vector<16x256xf32> to vector<16x256xbf16>
    %c32 = arith.constant 32 : index
    %c0_41 = arith.constant 0 : index
    %71 = vector.load %arg15[%c32, %c0_41] : memref<144x256xbf16, #tpu.memory_space<vmem>>, vector<16x256xbf16>
    tpu.vector_store %arg15[%c32, %c0_41], %70 {strides = array<i32>} : memref<144x256xbf16, #tpu.memory_space<vmem>>, vector<16x256xbf16>,
    %c1_i32 = arith.constant 1 : i32
    %72 = tpu.dynamic_rotate %48 by %c1_i32 dim 1 : vector<16x256xf32>, i32 -> vector<16x256xf32>
    %c3 = arith.constant 3 : index
    %c0_42 = arith.constant 0 : index
    %c0_43 = arith.constant 0 : index
    %73 = vector.load %arg13[%c3, %c0_42, %c0_43] : memref<9x1x256xf32, #tpu.memory_space<vmem>>, vector<1x1x256xf32>
    %74 = vector.shape_cast %73 : vector<1x1x256xf32> to vector<1x256xf32>
    %75 = vector.broadcast %74 : vector<1x256xf32> to vector<16x256xf32>
    %76 = arith.mulf %72, %75 : vector<16x256xf32>
    %77 = arith.truncf %76 : vector<16x256xf32> to vector<16x256xbf16>
    %c48 = arith.constant 48 : index
    %c0_44 = arith.constant 0 : index
    %78 = vector.load %arg15[%c48, %c0_44] : memref<144x256xbf16, #tpu.memory_space<vmem>>, vector<16x256xbf16>
    tpu.vector_store %arg15[%c48, %c0_44], %77 {strides = array<i32>} : memref<144x256xbf16, #tpu.memory_space<vmem>>, vector<16x256xbf16>,
    %79 = arith.truncf %48 : vector<16x256xf32> to vector<16x256xbf16>
    %c64 = arith.constant 64 : index
    %c0_45 = arith.constant 0 : index
    %80 = vector.load %arg15[%c64, %c0_45] : memref<144x256xbf16, #tpu.memory_space<vmem>>, vector<16x256xbf16>
    tpu.vector_store %arg15[%c64, %c0_45], %79 {strides = array<i32>} : memref<144x256xbf16, #tpu.memory_space<vmem>>, vector<16x256xbf16>,
    %c255_i32 = arith.constant 255 : i32
    %81 = tpu.dynamic_rotate %48 by %c255_i32 dim 1 : vector<16x256xf32>, i32 -> vector<16x256xf32>
    %c5 = arith.constant 5 : index
    %c0_46 = arith.constant 0 : index
    %c0_47 = arith.constant 0 : index
    %82 = vector.load %arg13[%c5, %c0_46, %c0_47] : memref<9x1x256xf32, #tpu.memory_space<vmem>>, vector<1x1x256xf32>
    %83 = vector.shape_cast %82 : vector<1x1x256xf32> to vector<1x256xf32>
    %84 = vector.broadcast %83 : vector<1x256xf32> to vector<16x256xf32>
    %85 = arith.mulf %81, %84 : vector<16x256xf32>
    %86 = arith.truncf %85 : vector<16x256xf32> to vector<16x256xbf16>
    %c80 = arith.constant 80 : index
    %c0_48 = arith.constant 0 : index
    %87 = vector.load %arg15[%c80, %c0_48] : memref<144x256xbf16, #tpu.memory_space<vmem>>, vector<16x256xbf16>
    tpu.vector_store %arg15[%c80, %c0_48], %86 {strides = array<i32>} : memref<144x256xbf16, #tpu.memory_space<vmem>>, vector<16x256xbf16>,
    %c241_i32 = arith.constant 241 : i32
    %88 = tpu.dynamic_rotate %48 by %c241_i32 dim 1 : vector<16x256xf32>, i32 -> vector<16x256xf32>
    %c6 = arith.constant 6 : index
    %c0_49 = arith.constant 0 : index
    %c0_50 = arith.constant 0 : index
    %89 = vector.load %arg13[%c6, %c0_49, %c0_50] : memref<9x1x256xf32, #tpu.memory_space<vmem>>, vector<1x1x256xf32>
    %90 = vector.shape_cast %89 : vector<1x1x256xf32> to vector<1x256xf32>
    %91 = vector.broadcast %90 : vector<1x256xf32> to vector<16x256xf32>
    %92 = arith.mulf %88, %91 : vector<16x256xf32>
    %93 = arith.truncf %92 : vector<16x256xf32> to vector<16x256xbf16>
    %c96 = arith.constant 96 : index
    %c0_51 = arith.constant 0 : index
    %94 = vector.load %arg15[%c96, %c0_51] : memref<144x256xbf16, #tpu.memory_space<vmem>>, vector<16x256xbf16>
    tpu.vector_store %arg15[%c96, %c0_51], %93 {strides = array<i32>} : memref<144x256xbf16, #tpu.memory_space<vmem>>, vector<16x256xbf16>,
    %c240_i32 = arith.constant 240 : i32
    %95 = tpu.dynamic_rotate %48 by %c240_i32 dim 1 : vector<16x256xf32>, i32 -> vector<16x256xf32>
    %c7 = arith.constant 7 : index
    %c0_52 = arith.constant 0 : index
    %c0_53 = arith.constant 0 : index
    %96 = vector.load %arg13[%c7, %c0_52, %c0_53] : memref<9x1x256xf32, #tpu.memory_space<vmem>>, vector<1x1x256xf32>
    %97 = vector.shape_cast %96 : vector<1x1x256xf32> to vector<1x256xf32>
    %98 = vector.broadcast %97 : vector<1x256xf32> to vector<16x256xf32>
    %99 = arith.mulf %95, %98 : vector<16x256xf32>
    %100 = arith.truncf %99 : vector<16x256xf32> to vector<16x256xbf16>
    %c112 = arith.constant 112 : index
    %c0_54 = arith.constant 0 : index
    %101 = vector.load %arg15[%c112, %c0_54] : memref<144x256xbf16, #tpu.memory_space<vmem>>, vector<16x256xbf16>
    tpu.vector_store %arg15[%c112, %c0_54], %100 {strides = array<i32>} : memref<144x256xbf16, #tpu.memory_space<vmem>>, vector<16x256xbf16>,
    %c239_i32 = arith.constant 239 : i32
    %102 = tpu.dynamic_rotate %48 by %c239_i32 dim 1 : vector<16x256xf32>, i32 -> vector<16x256xf32>
    %c8 = arith.constant 8 : index
    %c0_55 = arith.constant 0 : index
    %c0_56 = arith.constant 0 : index
    %103 = vector.load %arg13[%c8, %c0_55, %c0_56] : memref<9x1x256xf32, #tpu.memory_space<vmem>>, vector<1x1x256xf32>
    %104 = vector.shape_cast %103 : vector<1x1x256xf32> to vector<1x256xf32>
    %105 = vector.broadcast %104 : vector<1x256xf32> to vector<16x256xf32>
    %106 = arith.mulf %102, %105 : vector<16x256xf32>
    %107 = arith.truncf %106 : vector<16x256xf32> to vector<16x256xbf16>
    %c128 = arith.constant 128 : index
    %c0_57 = arith.constant 0 : index
    %108 = vector.load %arg15[%c128, %c0_57] : memref<144x256xbf16, #tpu.memory_space<vmem>>, vector<16x256xbf16>
    tpu.vector_store %arg15[%c128, %c0_57], %107 {strides = array<i32>} : memref<144x256xbf16, #tpu.memory_space<vmem>>, vector<16x256xbf16>,
    %c0_58 = arith.constant 0 : index
    %c0_59 = arith.constant 0 : index
    %109 = vector.load %arg10[%c0_58, %c0_59] : memref<8x144xbf16, #tpu.memory_space<vmem>>, vector<8x144xbf16>
    %c0_60 = arith.constant 0 : index
    %c0_61 = arith.constant 0 : index
    %110 = vector.load %arg15[%c0_60, %c0_61] : memref<144x256xbf16, #tpu.memory_space<vmem>>, vector<144x256xbf16>
    %cst_62 = arith.constant dense<0.000000e+00> : vector<8x256xf32>
    %111 = tpu.matmul %109, %110, %cst_62 {dimension_numbers = #tpu.dot_dimension_numbers<[1], [0], [0], [1], [0, 0, 1, 1], [], []>} : vector<8x144xbf16>, vector<144x256xbf16>, vector<8x256xf32> -> vector<8x256xf32>
    %c0_63 = arith.constant 0 : index
    %c0_64 = arith.constant 0 : index
    %112 = vector.load %arg11[%c0_63, %c0_64] : memref<8x1xf32, #tpu.memory_space<vmem>>, vector<8x1xf32>
    %113 = vector.broadcast %112 : vector<8x1xf32> to vector<8x256xf32>
    %114 = arith.addf %111, %113 : vector<8x256xf32>
    %c0_65 = arith.constant 0 : index
    %c0_66 = arith.constant 0 : index
    %115 = vector.load %arg12[%c0_65, %c0_66] : memref<8x2xbf16, #tpu.memory_space<vmem>>, vector<8x2xbf16>
    %116 = arith.truncf %50 : vector<2x256xf32> to vector<2x256xbf16>
    %cst_67 = arith.constant dense<0.000000e+00> : vector<8x256xf32>
    %117 = tpu.matmul %115, %116, %cst_67 {dimension_numbers = #tpu.dot_dimension_numbers<[1], [0], [0], [1], [0, 0, 1, 1], [], []>} : vector<8x2xbf16>, vector<2x256xbf16>, vector<8x256xf32> -> vector<8x256xf32>
    %c0_68 = arith.constant 0 : index
    %c0_69 = arith.constant 0 : index
    %118 = vector.load %arg6[%c0_68, %c0_69] : memref<256x1xf32, #tpu.memory_space<vmem>>, vector<256x1xf32>
    %cst_70 = arith.constant dense<0.000000e+00> : vector<8x1xf32>
    %119 = tpu.matmul %114, %118, %cst_70 {dimension_numbers = #tpu.dot_dimension_numbers<[1], [0], [0], [1], [0, 0, 1, 1], [], []>} : vector<8x256xf32>, vector<256x1xf32>, vector<8x1xf32> -> vector<8x1xf32>
    %c0_71 = arith.constant 0 : index
    %c0_72 = arith.constant 0 : index
    %120 = vector.load %arg6[%c0_71, %c0_72] : memref<256x1xf32, #tpu.memory_space<vmem>>, vector<256x1xf32>
    %cst_73 = arith.constant dense<0.000000e+00> : vector<8x1xf32>
    %121 = tpu.matmul %117, %120, %cst_73 {dimension_numbers = #tpu.dot_dimension_numbers<[1], [0], [0], [1], [0, 0, 1, 1], [], []>} : vector<8x256xf32>, vector<256x1xf32>, vector<8x1xf32> -> vector<8x1xf32>
    %122 = tpu.concatenate %119, %121 in 0 : vector<8x1xf32>, vector<8x1xf32> -> vector<16x1xf32>
    %cst_74 = arith.constant dense<0xFF800000> : vector<1xf32>
    %123 = vector.multi_reduction <maximumf>, %122, %cst_74 [0] : vector<16x1xf32> to vector<1xf32>
    %124 = vector.shape_cast %123 : vector<1xf32> to vector<1x1xf32>
    %125 = vector.broadcast %124 : vector<1x1xf32> to vector<16x1xf32>
    %126 = arith.subf %122, %125 : vector<16x1xf32>
    %127 = math.exp %126 : vector<16x1xf32>
    %cst_75 = arith.constant dense<0.000000e+00> : vector<1xf32>
    %128 = vector.multi_reduction <add>, %127, %cst_75 [0] : vector<16x1xf32> to vector<1xf32>
    %129 = vector.shape_cast %128 : vector<1xf32> to vector<1x1xf32>
    %130 = vector.broadcast %129 : vector<1x1xf32> to vector<16x1xf32>
    %131 = arith.divf %127, %130 : vector<16x1xf32>
    %132 = vector.extract_strided_slice %131 {offsets = [0, 0], sizes = [8, 1], strides = [1, 1]} : vector<16x1xf32> to vector<8x1xf32>
    %133 = vector.shape_cast %132 : vector<8x1xf32> to vector<8x1xf32>
    %134 = vector.broadcast %133 : vector<8x1xf32> to vector<8x256xf32>
    %135 = vector.extract_strided_slice %131 {offsets = [8, 0], sizes = [8, 1], strides = [1, 1]} : vector<16x1xf32> to vector<8x1xf32>
    %136 = vector.shape_cast %135 : vector<8x1xf32> to vector<8x1xf32>
    %137 = vector.broadcast %136 : vector<8x1xf32> to vector<8x256xf32>
    %138 = arith.mulf %134, %114 : vector<8x256xf32>
    %139 = arith.mulf %137, %117 : vector<8x256xf32>
    %140 = arith.addf %138, %139 : vector<8x256xf32>
    %c0_76 = arith.constant 0 : index
    %c0_77 = arith.constant 0 : index
    %141 = vector.load %arg14[%c0_76, %c0_77] : memref<8x256xf32, #tpu.memory_space<vmem>>, vector<8x256xf32>
    tpu.vector_store %arg14[%c0_76, %c0_77], %140 {strides = array<i32>} : memref<8x256xf32, #tpu.memory_space<vmem>>, vector<8x256xf32>,
    return
  }
  func.func @transform_0(%arg0: i32) -> (i32, i32) {
    %c0_i32 = arith.constant 0 : i32
    %c0_i32_0 = arith.constant 0 : i32
    return %c0_i32, %arg0 : i32, i32
  }
  func.func @transform_1(%arg0: i32) -> (i32, i32) {
    %c0_i32 = arith.constant 0 : i32
    %c0_i32_0 = arith.constant 0 : i32
    %c0_i32_1 = arith.constant 0 : i32
    return %c0_i32, %c0_i32_0 : i32, i32
  }
  func.func @transform_2(%arg0: i32) -> (i32, i32) {
    %c0_i32 = arith.constant 0 : i32
    %c0_i32_0 = arith.constant 0 : i32
    %c0_i32_1 = arith.constant 0 : i32
    return %c0_i32, %c0_i32_0 : i32, i32
  }
  func.func @transform_3(%arg0: i32) -> (i32, i32) {
    %c0_i32 = arith.constant 0 : i32
    %c0_i32_0 = arith.constant 0 : i32
    %c0_i32_1 = arith.constant 0 : i32
    return %c0_i32, %c0_i32_0 : i32, i32
  }
  func.func @transform_4(%arg0: i32) -> (i32, i32) {
    %c0_i32 = arith.constant 0 : i32
    %c0_i32_0 = arith.constant 0 : i32
    %c0_i32_1 = arith.constant 0 : i32
    return %c0_i32, %c0_i32_0 : i32, i32
  }
  func.func @transform_5(%arg0: i32) -> (i32, i32) {
    %c0_i32 = arith.constant 0 : i32
    %c0_i32_0 = arith.constant 0 : i32
    %c0_i32_1 = arith.constant 0 : i32
    return %c0_i32, %c0_i32_0 : i32, i32
  }
  func.func @transform_6(%arg0: i32) -> (i32, i32) {
    %c0_i32 = arith.constant 0 : i32
    %c0_i32_0 = arith.constant 0 : i32
    %c0_i32_1 = arith.constant 0 : i32
    return %c0_i32, %c0_i32_0 : i32, i32
  }
  func.func @transform_7(%arg0: i32) -> (i32, i32) {
    %c0_i32 = arith.constant 0 : i32
    %c0_i32_0 = arith.constant 0 : i32
    %c0_i32_1 = arith.constant 0 : i32
    return %c0_i32, %c0_i32_0 : i32, i32
  }
  func.func @transform_8(%arg0: i32) -> (i32, i32) {
    %c0_i32 = arith.constant 0 : i32
    %c0_i32_0 = arith.constant 0 : i32
    %c0_i32_1 = arith.constant 0 : i32
    return %c0_i32, %c0_i32_0 : i32, i32
  }
  func.func @transform_9(%arg0: i32) -> (i32, i32) {
    %c0_i32 = arith.constant 0 : i32
    %c0_i32_0 = arith.constant 0 : i32
    %c0_i32_1 = arith.constant 0 : i32
    return %c0_i32, %c0_i32_0 : i32, i32
  }
  func.func @transform_10(%arg0: i32) -> (i32, i32) {
    %c0_i32 = arith.constant 0 : i32
    %c0_i32_0 = arith.constant 0 : i32
    %c0_i32_1 = arith.constant 0 : i32
    return %c0_i32, %c0_i32_0 : i32, i32
  }
  func.func @transform_11(%arg0: i32) -> (i32, i32) {
    %c0_i32 = arith.constant 0 : i32
    %c0_i32_0 = arith.constant 0 : i32
    %c0_i32_1 = arith.constant 0 : i32
    return %c0_i32, %c0_i32_0 : i32, i32
  }
  func.func @transform_12(%arg0: i32) -> (i32, i32, i32) {
    %c0_i32 = arith.constant 0 : i32
    %c0_i32_0 = arith.constant 0 : i32
    %c0_i32_1 = arith.constant 0 : i32
    %c0_i32_2 = arith.constant 0 : i32
    return %c0_i32, %c0_i32_0, %c0_i32_1 : i32, i32, i32
  }
  func.func @transform_13(%arg0: i32) -> (i32, i32) {
    %c0_i32 = arith.constant 0 : i32
    %c0_i32_0 = arith.constant 0 : i32
    return %c0_i32, %arg0 : i32, i32
  }
}

</mosaic_0001>

<bundles_post_ra>
// kernel: tpu_custom_call.1
= control target key start
LH: loop header
LB: loop body
LE: loop exit
PB: predicated region body
PF: predicated region fallthrough
CT: control target
= control target key end

     0   :  { %s2939_s0 = inlined_call_operand.vmem [shape: f32[8,512], index: 0, kind: input, shape index: {}]   ;;  %s2940_s1 = inlined_call_operand.vmem [shape: f32[8,1], index: 1, kind: input, shape index: {}]   ;;  %s2941_s2 = inlined_call_operand.vmem [shape: f32[8,1], index: 2, kind: input, shape index: {}]   ;;  %s2942_s3 = inlined_call_operand.vmem [shape: f32[8,1], index: 3, kind: input, shape index: {}]   ;;  %s2943_s4 = inlined_call_operand.vmem [shape: f32[8,8], index: 4, kind: input, shape index: {}]   ;;  %s2944_s5 = inlined_call_operand.vmem [shape: f32[256,1], index: 5, kind: input, shape index: {}]   ;;  %s2945_s6 = inlined_call_operand.vmem [shape: f32[1,256], index: 6, kind: input, shape index: {}]   ;;  %s2946_s7 = inlined_call_operand.vmem [shape: bf16[16,8], index: 7, kind: input, shape index: {}]   ;;  %s2947_s8 = inlined_call_operand.vmem [shape: bf16[2,8], index: 8, kind: input, shape index: {}]   ;;  %s2948_s9 = inlined_call_operand.vmem [shape: bf16[8,144], index: 9, kind: input, shape index: {}]   ;;  %s2949_s10 = inlined_call_operand.vmem [shape: f32[8,1], index: 10, kind: input, shape index: {}]   ;;  %s2950_s11 = inlined_call_operand.vmem [shape: bf16[8,2], index: 11, kind: input, shape index: {}]   ;;  %s2951_s12 = inlined_call_operand.vmem [shape: f32[9,1,256], index: 12, kind: input, shape index: {}]   ;;  %s2952_s13 = inlined_call_operand.hbm [shape: f32[8,512], index: 13, kind: output, shape index: {}]  }
   0x1   :  { %2964 = sst [smem:[#allocation17_spill]] %s2939_s0 }
   0x2   :  { %2965 = sst [smem:[#allocation18_spill]] %s2940_s1 }
   0x3   :  { %18 = vsyncpa [#allocation4], 0 }
   0x4   :  { %20 = vsyncpa [#allocation4 + $0x1], 0  ;;  %s2277_s24 = smov 0   ;;  %s2279_s25 = smov 0  }
   0x5   :  { %s2281_s26 = smov 0   ;;  %s2283_s27 = smov 0  }
   0x6 LB: > { %s2298_s28 = sadd.s32 4294967295, %s2193_s27   ;;  %s1802_s29 = sadd.s32 4294967294, %s2193_s27   ;;  %s2193_s27 = sphi %s2283_s27, %s2997_s27   ;;  %s2189_s26 = sphi %s2281_s26, %s2996_s26   ;;  %s2185_s25 = sphi %s2279_s25, %s2995_s25   ;;  %s2181_s24 = sphi %s2277_s24, %s2994_s24  }
   0x7   : > { %s2302_s30 = sadd.s32 1, %s2193_s27   ;;  %s311_s14 = sadd.s32 1, %s2189_s26 }
   0x8   : > { %s308_s15 = ssub.s32 %s2193_s27, %s2302_s30  ;;  %p321_p0 = scmp.ne.s32.totalorder %s2189_s26, %s2185_s25 }
   0x9   : > { %p309_p1 = scmp.eq.s32.totalorder %s308_s15, 0  ;;  %p322_p2 = scmp.eq.s32.totalorder %s2298_s28, 1 }
   0xa   : > { %p327_p3 = scmp.ne.s32.totalorder %s2185_s25, %s2181_s24  ;;  %p328_p4 = scmp.eq.s32.totalorder %s1802_s29, 1 }
   0xb   : > { %s2313_s16 = scalar_select %p309_p1, %s2189_s26, %s311_s14  }
   0xc   : > { %p2315_p5 = por %p322_p2, %p321_p0  ;;  %p2319_p6 = por %p328_p4, %p327_p3 }
   0xd   : > { %p1805_p7 = scmp.ge.s32.totalorder %s2193_s27, 1  ;;  %p391_p8 = scmp.lt.s32.totalorder %s2193_s27, 3 }
   0xf   : > { %p392_p9 = pnand %p1805_p7, %p391_p8 }
  0x11   : > { %395 = sbr.rel (%p392_p9) target bundleno = 1630 (0x65e), region = 72 }
  0x16   : > { %v2328_v0 = vld [vmem:[%s2944_s5 + $0xf8] sm:$0xff]  ;;  %v2338_v2 = vld [vmem:[%s2944_s5 + $0xf0] sm:$0xff]  ;;  %v2352_v4 = vld [vmem:[%s2944_s5 + $0xe8] sm:$0xff]  ;;  %s1807_s15 = sshll.u32 %s2298_s28, 1  ;;  %s2974_s0 = sld [smem:[#allocation17_spill]]  ;;  %v2195_v36 = vmov 0.0  }
  0x17   : > { %v2333_v1 = vld [vmem:[%s2944_s5 + $0x78] sm:$0xff]  ;;  %1908 = vmatprep.subr.mxu0 %v2328_v0  ;;  %1943 = vmatprep.subr.mxu1 %v2328_v0  ;;  %v2345_v3 = vld [vmem:[%s2944_s5 + $0x70] sm:$0xff]  ;;  %v2359_v5 = vld [vmem:[%s2944_s5 + $0x68] sm:$0xff]  ;;  %p436_p10 = scmp.lt.s32.totalorder %s1807_s15, 3  ;;  %vm2196_vm0 = vmmov 0   ;;  %vm620_vm1 = vcmask 64512  }
  0x18   : > { %1909 = vmatpush3.msra.mxu0 %v2333_v1  ;;  %1944 = vmatpush3.msra.mxu1 %v2333_v1  ;;  %v2366_v6 = vld [vmem:[%s2944_s5 + $0xe0] sm:$0xff]  ;;  %v2380_v8 = vld [vmem:[%s2944_s5 + $0xd8] sm:$0xff]  ;;  %v2394_v10 = vld [vmem:[%s2944_s5 + $0xd0] sm:$0xff]  ;;  %v2197_v44 = vmov 0   ;;  %s2980_s1 = sld [smem:[#allocation18_spill]]  ;;  %vm827_vm4 = vcmask 1043456  }
  0x19   : > { %1910 = vmatprep.subr.mxu0 %v2338_v2  ;;  %1945 = vmatprep.subr.mxu1 %v2338_v2  ;;  %v2373_v7 = vld [vmem:[%s2944_s5 + $0x60] sm:$0xff]  ;;  %v2387_v9 = vld [vmem:[%s2944_s5 + $0x58] sm:$0xff]  ;;  %v2401_v11 = vld [vmem:[%s2944_s5 + $0x50] sm:$0xff]  ;;  %s2999_s15 = smov (!%p436_p10, %s1807_s15), 3  ;;  %s2199_s22 = smov 112   ;;  %vm1462_vm5 = vcmask 1040384  }
  0x1a   : > { %1911 = vmatpush3.msra.mxu0 %v2345_v3  ;;  %1946 = vmatpush3.msra.mxu1 %v2345_v3  ;;  %v2408_v12 = vld [vmem:[%s2944_s5 + $0xc8] sm:$0xff]  ;;  %v2423_v14 = vld [vmem:[%s2944_s5 + $0xc0] sm:$0xff]  ;;  %v2437_v16 = vld [vmem:[%s2944_s5 + $0xb8] sm:$0xff]  ;;  %s1808_s29 = sshll.u32 %s2999_s15, 3  ;;  %s2200_s23 = smov 127   ;;  %vm1458_vm6 = vcmask 15360  }
  0x1b   : > { %1912 = vmatprep.subr.mxu0 %v2352_v4  ;;  %1947 = vmatprep.subr.mxu1 %v2352_v4  ;;  %v2416_v13 = vld [vmem:[%s2944_s5 + $0x48] sm:$0xff]  ;;  %v2430_v15 = vld [vmem:[%s2944_s5 + $0x40] sm:$0xff]  ;;  %v2444_v17 = vld [vmem:[%s2944_s5 + $0x38] sm:$0xff]  ;;  %s2201_s6 = smov 1   ;;  %s2202_s19 = smov 15   ;;  %vm1410_vm7 = vcmask 130048  }
  0x1c   : > { %1913 = vmatpush3.msra.mxu0 %v2359_v5  ;;  %1948 = vmatpush3.msra.mxu1 %v2359_v5  ;;  %v2451_v18 = vld [vmem:[%s2944_s5 + $0xb0] sm:$0xff]  ;;  %v2465_v20 = vld [vmem:[%s2944_s5 + $0xa8] sm:$0xff]  ;;  %v2479_v22 = vld [vmem:[%s2944_s5 + $0xa0] sm:$0xff]  ;;  %s439_s14 = scalar_lea.vmem %s2974_s0, %s1808_s29  ;;  %s2198_s29 = smov 113  }
  0x1d   : > { %1914 = vmatprep.subr.mxu0 %v2366_v6  ;;  %1949 = vmatprep.subr.mxu1 %v2366_v6  ;;  %v2458_v19 = vld [vmem:[%s2944_s5 + $0x30] sm:$0xff]  ;;  %v2472_v21 = vld [vmem:[%s2944_s5 + $0x28] sm:$0xff]  ;;  %2969 = vst [vmem:[#allocation7_spill] sm:$0xff] %v2479_v22  ;;  %v2486_v23 = vld [vmem:[%s2944_s5 + $0x20] sm:$0xff]  ;;  %s2203_s20 = smov 16   ;;  %s2205_s21 = smov 111  }
  0x1e   : > { %1915 = vmatpush3.msra.mxu0 %v2373_v7  ;;  %1950 = vmatpush3.msra.mxu1 %v2373_v7  ;;  %2968 = vst [vmem:[#allocation6_spill] sm:$0xff] %v2472_v21  ;;  %2970 = vst [vmem:[#allocation8_spill] sm:$0xff] %v2486_v23  ;;  %v2493_v24 = vld [vmem:[%s2944_s5 + $0x98] sm:$0xff]  ;;  %v2507_v26 = vld [vmem:[%s2944_s5 + $0x90] sm:$0xff] }
  0x1f   : > { %1916 = vmatprep.subr.mxu0 %v2380_v8  ;;  %1951 = vmatprep.subr.mxu1 %v2380_v8  ;;  %2971 = vst [vmem:[#allocation9_spill] sm:$0xff] %v2493_v24  ;;  %v2500_v25 = vld [vmem:[%s2944_s5 + $0x18] sm:$0xff]  ;;  %2973 = vst [vmem:[#allocation11_spill] sm:$0xff] %v2507_v26  ;;  %v2517_v27 = vld [vmem:[%s2944_s5 + $0x10] sm:$0xff] }
  0x20   : > { %1917 = vmatpush3.msra.mxu0 %v2387_v9  ;;  %1952 = vmatpush3.msra.mxu1 %v2387_v9  ;;  %2972 = vst [vmem:[#allocation10_spill] sm:$0xff] %v2500_v25  ;;  %2975 = vst [vmem:[#allocation12_spill] sm:$0xff] %v2517_v27  ;;  %v2524_v28 = vld [vmem:[%s2944_s5 + $0x88] sm:$0xff]  ;;  %v2540_v31 = vld [vmem:[%s2944_s5 + $0x80] sm:$0xff] }
  0x21   : > { %1918 = vmatprep.subr.mxu0 %v2394_v10  ;;  %1953 = vmatprep.subr.mxu1 %v2394_v10  ;;  %2976 = vst [vmem:[#allocation13_spill] sm:$0xff] %v2524_v28  ;;  %v2531_v29 = vld [vmem:[%s2944_s5 + $0x8] sm:$0xff]  ;;  %2978 = vst [vmem:[#allocation15_spill] sm:$0xff] %v2540_v31  ;;  %v2542_v32 = vld [vmem:[%s439_s14] sm:$0xff] }
  0x22   : > { %1919 = vmatpush3.msra.mxu0 %v2401_v11  ;;  %1954 = vmatpush3.msra.mxu1 %v2401_v11  ;;  %2977 = vst [vmem:[#allocation14_spill] sm:$0xff] %v2531_v29  ;;  %v2533_v30 = vld [vmem:[%s439_s14 + $0x8] sm:$0xff]  ;;  %v2549_v33 = vld [vmem:[%s2944_s5] sm:$0xff]  ;;  %v547_v35 = vmul.f32 %v2542_v32, %v2542_v32  ;;  %s2204_s14 = smov 17  }
  0x23   : > { %1920 = vmatprep.subr.mxu0 %v2408_v12  ;;  %1955 = vmatprep.subr.mxu1 %v2408_v12  ;;  %2979 = vst [vmem:[#allocation16_spill] sm:$0xff] %v2549_v33  ;;  %v548_v34 = vmul.f32 %v2533_v30, %v2533_v30  ;;  %v619_v41 = vld [vmem:[%s2943_s4] sm:$0xff] }
  0x24   : > { %1921 = vmatpush3.msra.mxu0 %v2416_v13  ;;  %1956 = vmatpush3.msra.mxu1 %v2416_v13  ;;  %v769_v53 = vld [vmem:[%s2980_s1] sm:$0xff] }
  0x25   : > { %1922 = vmatprep.subr.mxu0 %v2423_v14  ;;  %1957 = vmatprep.subr.mxu1 %v2423_v14  ;;  %v770_v54 = vld [vmem:[%s2942_s3] sm:$0xff] }
  0x26   : > { %1923 = vmatpush3.msra.mxu0 %v2430_v15  ;;  %1958 = vmatpush3.msra.mxu1 %v2430_v15  ;;  %v771_v55 = vmul.f32 %v770_v54, %v769_v53  ;;  %v773_v56 = vld [vmem:[%s2941_s2] sm:$0xff] }
  0x27   : > { %1924 = vmatprep.subr.mxu0 %v2437_v16  ;;  %1959 = vmatprep.subr.mxu1 %v2437_v16  ;;  %v774_v59 = vmul.f32 %v773_v56, %v770_v54 }
  0x28   : > { %1925 = vmatpush3.msra.mxu0 %v2444_v17  ;;  %1960 = vmatpush3.msra.mxu1 %v2444_v17 }
  0x29   : > { %1926 = vmatprep.subr.mxu0 %v2451_v18  ;;  %1961 = vmatprep.subr.mxu1 %v2451_v18 }
  0x2a   : > { %1927 = vmatpush3.msra.mxu0 %v2458_v19  ;;  %1962 = vmatpush3.msra.mxu1 %v2458_v19 }
  0x2b   : > { %1928 = vmatprep.subr.mxu0 %v2465_v20  ;;  %1963 = vmatprep.subr.mxu1 %v2465_v20 }
  0x2c   : > { %1929 = vmatpush3.msra.mxu0 %v2472_v21  ;;  %1964 = vmatpush3.msra.mxu1 %v2472_v21 }
  0x2d   : > { %1930 = vmatprep.subr.mxu0 %v2479_v22  ;;  %1965 = vmatprep.subr.mxu1 %v2479_v22 }
  0x2e   : > { %1931 = vmatpush3.msra.mxu0 %v2486_v23  ;;  %1966 = vmatpush3.msra.mxu1 %v2486_v23 }
  0x2f   : > { %1932 = vmatprep.subr.mxu0 %v2493_v24  ;;  %1967 = vmatprep.subr.mxu1 %v2493_v24 }
  0x30   : > { %1933 = vmatpush3.msra.mxu0 %v2500_v25  ;;  %1968 = vmatpush3.msra.mxu1 %v2500_v25 }
  0x31   : > { %1934 = vmatprep.subr.mxu0 %v2507_v26  ;;  %1969 = vmatprep.subr.mxu1 %v2507_v26 }
  0x32   : > { %1935 = vmatpush3.msra.mxu0 %v2517_v27  ;;  %1970 = vmatpush3.msra.mxu1 %v2517_v27 }
  0x33   : > { %1936 = vmatprep.subr.mxu0 %v2524_v28  ;;  %1971 = vmatprep.subr.mxu1 %v2524_v28 }
  0x34   : > { %1937 = vmatpush3.msra.mxu0 %v2531_v29  ;;  %541 = vmatprep.mubr.f32.mxu0 %v2533_v30 }
  0x35   : > { %1938 = vmatprep.subr.mxu0 %v2540_v31  ;;  %1972 = vmatpush3.msra.mxu1 %v2531_v29 }
  0x36   : > { %1939 = vmatpush3.msra.mxu0 %v2549_v33  ;;  %1973 = vmatprep.subr.mxu1 %v2540_v31 }
  0x37   : > { %542 = vmatmul.mubr.f32.vlgmr.msra.gmra.mxu0 %v2542_v32  ;;  %1974 = vmatpush3.msra.mxu1 %v2549_v33 }
  0x38   : > { %613 = vmatprep.mubr.f32.mxu1 %v548_v34  ;;  %2052 = vmatprep.subr.mxu1 %v2195_v36 }
  0x39   : > { %614 = vmatmul.mubr.f32.vlgmr.msra.gmra.mxu1 %v547_v35  ;;  %2112 = vset.pattern.permute.xlu0 %v2197_v44 }
  0x3a   : > { %2054 = vmatprep.mubr.msk.f32.mxu1 %vm2196_vm0, %v2195_v36  ;;  %2113 = vset.pattern.permute.xlu1 %v2197_v44 }
  0xf7   : > { %v1940_v37 = vpop.f32.mrf.mxu0 }
  0xf9   : > { %v1941_v38 = vpop.f32.mrf.mxu0  ;;  %v1975_v39 = vpop.f32.mrf.mxu1 }
  0xfa   : > { %v1942_v40 = vadd.f32 %v1941_v38, %v1940_v37 }
  0xfb   : > { %v1976_v42 = vpop.f32.mrf.mxu1 }
  0xfc   : > { %v1977_v43 = vadd.f32 %v1976_v42, %v1975_v39  ;;  %2053 = vmatpush3.msra.mxu1 %v1942_v40 }
  0xfd   : > { %2055 = vmatmul.mubr.msk.f32.vlgmr.msra.gmra.mxu1 %vm620_vm1, %v619_v41  ;;  %2057 = vmatprep.subr.mxu1 %v2195_v36 }
  0xfe   : > { %2058 = vmatpush3.msra.mxu1 %v1977_v43  ;;  %2059 = vmatprep.mubr.msk.f32.mxu1 %vm2196_vm0, %v2195_v36  ;;  %vm1682_vm0 = vcmask 7168  }
 0x101   : > { %2060 = vmatmul.mubr.msk.f32.vlgmr.msra.gmra.mxu1 %vm620_vm1, %v619_v41 }
 0x102   : > { %866 = vmatprep.mubr.bf16.mxu1 %v2197_v44 }
 0x1bd   : > { %v690_v45 = vpop.f32.mrf.mxu1 }
 0x1be   : > { %v764_v47 = vmul.f32 %v690_v45, %v690_v45 }
 0x1bf   : > { %v2056_v46 = vpop.f32.mrf.mxu1 }
 0x1c1   : > { %v760_v48 = vpop.f32.mrf.mxu1 }
 0x1c2   : > { %v765_v49 = vsub.f32 %v760_v48, %v764_v47 }
 0x1c3   : > { %v2061_v50 = vpop.f32.mrf.mxu1 }
 0x1c4   : > { %v766_v51 = vmax.f32 %v765_v49, 0.0 }
 0x1c6   : > { %v767_v52 = vadd.f32 1e-05, %v766_v51 }
 0x1c8   : > { %2117 = vrsqrt.f32 %v767_v52 }
 0x1d5   : > { %v2118_v57 = vpop.eup %2117 }
 0x1d6   : > { %v772_v58 = vmul.f32 %v2118_v57, %v771_v55 }
 0x1d8   : > { %779 = vperm.xlu0 %2112, %v772_v58   ;;  %v775_v60 = vmul.f32 %v772_v58, %v690_v45 }
 0x1da   : > { %v776_v61 = vsub.f32 %v774_v59, %v775_v60  ;;  %v2114_v60 = vld [vmem:[%s2946_s7] sm:$0xff]  }
 0x1dc   : > { %786 = vperm.xlu0 %2112, %v776_v61  }
 0x253   : > { %v780_v62 = vpop.permute.xlu0 %779 }
 0x254   : > { %v782_v63 = vmul.f32 %v780_v62, %v2542_v32  ;;  %v783_v34 = vmul.f32 %v780_v62, %v2533_v30 }
 0x257   : > { %v787_v35 = vpop.permute.xlu0 %786 }
 0x258   : > { %v789_v36 = vadd.f32 %v787_v35, %v782_v63  ;;  %v790_v37 = vadd.f32 %v787_v35, %v783_v34 }
 0x25a   : > { %v1811_v38 = vmul.f32 -1.442695, %v789_v36  ;;  %v1812_v39 = vmul.f32 -1.442695, %v790_v37 }
 0x25c   : > { %2119 = vpow2.f32 %v1811_v38 }
 0x25d   : > { %2121 = vpow2.f32 %v1812_v39 }
 0x269   : > { %v2120_v40 = vpop.eup %2119 }
 0x26a   : > { %v2122_v41 = vpop.eup %2121  ;;  %v797_v42 = vadd.f32 1.0, %v2120_v40 }
 0x26b   : > { %v798_v43 = vadd.f32 1.0, %v2122_v41 }
 0x26c   : > { %2123 = vrcp.f32 %v797_v42  ;;  %v1455_v42 = vld [vmem:[%s2950_s11] sm:$0xf] }
 0x26d   : > { %2125 = vrcp.f32 %v798_v43  ;;  %v2663_v43 = vld [vmem:[%s2948_s9] sm:$0xff] }
 0x279   : > { %v2124_v45 = vpop.eup %2123 }
 0x27a   : > { %v2126_v46 = vpop.eup %2125  ;;  %v803_v47 = vmul.f32 %v2124_v45, %v2542_v32  ;;  %vm805_vm2 = vcmp.gt.f32.partialorder %v2124_v45, 0.5  ;;  %v1308_v45 = vld [vmem:[%s2949_s10] sm:$0xff] }
 0x27b   : > { %v804_v48 = vmul.f32 %v2126_v46, %v2533_v30  ;;  %vm806_vm3 = vcmp.gt.f32.partialorder %v2126_v46, 0.5  ;;  %v1844_v46 = vcombine.high %v2663_v43, %v2663_v43 }
 0x27c   : > { %v809_v49 = vsel %vm805_vm2, 0.0, %v803_v47  ;;  %v807_v53 = vsel %vm805_vm2, %v2542_v32, %v803_v47 }
 0x27d   : > { %v810_v50 = vsel %vm806_vm3, 0.0, %v804_v48  ;;  %v811_v51 = vrot.slane %v809_v49, 4  ;;  %v808_v54 = vsel %vm806_vm3, %v2533_v30, %v804_v48  ;;  %v877_v30 = vld [vmem:[%s2947_s8] sm:$0x1]  ;;  %1863 = vmatprep.mubr.msk.bf16.mxu0 %vm1410_vm7, %v1844_v46  ;;  %v1834_v46 = vld [vmem:[%s2951_s12 + $0xc] sm:$0x3] }
 0x27e   : > { %v812_v52 = vrot.slane %v810_v50, 4 }
 0x27f   : > { %v813_v55 = vadd.f32 %v811_v51, %v807_v53 }
 0x280   : > { %v814_v56 = vadd.f32 %v812_v52, %v808_v54 }
 0x281   : > { %v815_v57 = vpack.c.bf16 %v813_v55, %v813_v55 }
 0x282   : > { %v816_v58 = vpack.c.bf16 %v814_v56, %v814_v56 }
 0x283   : > { %v829_v59 = vsel %vm827_vm4, %v815_v57, 0  ;;  %v930_v57 = vlaneseq }
 0x284   : > { %1814 = vmatprep.subr.msk.bf16.mxu1 %vm827_vm4, %v816_v58 }
 0x285   : > { %849 = vmatpush1.bf16.msra.mxu1 %v829_v59 }
 0x286   : > { %1816 = vmatprep.subr.msk.bf16.mxu1 %vm827_vm4, %v816_v58 }
 0x288   : > { %1815 = vmatmul.mubr.msk.bf16.vlgmr.msra.gmra.mxu1 %vm620_vm1, %v2114_v60  ;;  %v940_v60 = vshrl.u32 %v930_v57, 7 }
 0x289   : > { %896 = vmatpush1.bf16.msra.mxu1 %v829_v59  ;;  %913 = vmatprep.mubr.bf16.mxu1 %v2197_v44 }
 0x290   : > { %1817 = vmatmul.mubr.msk.bf16.vlgmr.msra.gmra.mxu1 %vm620_vm1, %v877_v30  ;;  %v2717_v30 = vand.u32 127, %v930_v57 }
 0x291   : > { %1501 = vmatprep.mubr.bf16.mxu1 %v2197_v44 }
 0x292   : > { %vm1209_vm8 = vcmp.lt.s32.totalorder %v2717_v30, 112  ;;  %vm1165_vm9 = vcmp.lt.s32.totalorder %v2717_v30, 113  ;;  %vm1121_vm10 = vcmp.lt.s32.totalorder %v2717_v30, 127  ;;  %vm1063_vm11 = vcmp.lt.s32.totalorder %v2717_v30, 1 }
 0x293   : > { %vm1019_vm12 = vcmp.lt.s32.totalorder %v2717_v30, 15  ;;  %vm975_vm13 = vcmp.lt.s32.totalorder %v2717_v30, 16  ;;  %vm932_vm14 = vcmp.lt.s32.totalorder %v2717_v30, 17  ;;  %vm1253_vm15 = vcmp.lt.s32.totalorder %v2717_v30, 111 }
 0x348   : > { %v2596_v32 = vpop.f32.mrf.mxu1 }
 0x349   : > { %1157 = vrot.lane.b32.xlu0 %v2596_v32, %s2198_s29  ;;  %1201 = vrot.lane.b32.xlu1 %v2596_v32, %s2199_s22 }
 0x34a   : > { %v2601_v61 = vpop.f32.mrf.mxu1 }
 0x34c   : > { %v2603_v62 = vpop.f32.mrf.mxu1 }
 0x34d   : > { %1113 = vrot.lane.b32.xlu0 %v2596_v32, %s2200_s23  ;;  %1203 = vrot.lane.b32.xlu1 %v2603_v62, %s2199_s22 }
 0x34e   : > { %v2609_v63 = vpop.f32.mrf.mxu1 }
 0x350   : > { %v915_v35 = vpop.f32.mrf.mxu1 }
 0x351   : > { %1055 = vrot.lane.b32.xlu0 %v2596_v32, %s2201_s6  ;;  %1159 = vrot.lane.b32.xlu1 %v2603_v62, %s2198_s29  ;;  %v1456_v36 = vpack.c.bf16 %v915_v35, %v915_v35 }
 0x352   : > { %v917_v37 = vpop.f32.mrf.mxu1 }
 0x353   : > { %v1457_v38 = vpack.c.bf16 %v917_v37, %v917_v37  ;;  %v1464_v39 = vsel %vm1462_vm5, %v1456_v36, 0  ;;  %v2721_v37 = vsub.s32 0, %v940_v60 }
 0x354   : > { %v919_v40 = vpop.f32.mrf.mxu1 }
 0x355   : > { %1011 = vrot.lane.b32.xlu0 %v2596_v32, %s2202_s19  ;;  %1115 = vrot.lane.b32.xlu1 %v2603_v62, %s2200_s23 }
 0x356   : > { %v920_v41 = vpop.f32.mrf.mxu1  ;;  %1864 = vmatprep.subr.msk.bf16.mxu1 %vm1462_vm5, %v1457_v38  ;;  %v2723_v38 = vsub.s32 1, %v940_v60 }
 0x357   : > { %1484 = vmatpush1.bf16.msra.mxu1 %v1464_v39  ;;  %v1837_v39 = vld [vmem:[%s2951_s12 + $0xe] sm:$0x3] }
 0x358   : > { %1982 = vmatprep.subr.mxu1 %v2328_v0 }
 0x359   : > { %967 = vrot.lane.b32.xlu0 %v2596_v32, %s2203_s20  ;;  %1057 = vrot.lane.b32.xlu1 %v2603_v62, %s2201_s6 }
 0x35a   : > { %1865 = vmatmul.mubr.msk.bf16.vlgmr.msra.gmra.mxu1 %vm1458_vm6, %v1455_v42  ;;  %v1220_v42 = vrot.slane %v1837_v39, %v2721_v37 }
 0x35b   : > { %1983 = vmatpush3.msra.mxu1 %v2333_v1 }
 0x35c   : > { %1984 = vmatprep.subr.mxu1 %v2338_v2 }
 0x35d   : > { %922 = vrot.lane.b32.xlu0 %v2596_v32, %s2204_s14  ;;  %1013 = vrot.lane.b32.xlu1 %v2603_v62, %s2202_s19 }
 0x35e   : > { %1985 = vmatpush3.msra.mxu1 %v2345_v3 }
 0x35f   : > { %1986 = vmatprep.subr.mxu1 %v2352_v4 }
 0x360   : > { %1987 = vmatpush3.msra.mxu1 %v2359_v5 }
 0x361   : > { %1205 = vrot.lane.b32.xlu0 %v2601_v61, %s2199_s22  ;;  %969 = vrot.lane.b32.xlu1 %v2603_v62, %s2203_s20 }
 0x362   : > { %1988 = vmatprep.subr.mxu1 %v2366_v6 }
 0x363   : > { %1989 = vmatpush3.msra.mxu1 %v2373_v7 }
 0x364   : > { %1990 = vmatprep.subr.mxu1 %v2380_v8 }
 0x365   : > { %1161 = vrot.lane.b32.xlu0 %v2601_v61, %s2198_s29  ;;  %924 = vrot.lane.b32.xlu1 %v2603_v62, %s2204_s14 }
 0x366   : > { %1991 = vmatpush3.msra.mxu1 %v2387_v9 }
 0x367   : > { %1992 = vmatprep.subr.mxu1 %v2394_v10 }
 0x368   : > { %1993 = vmatpush3.msra.mxu1 %v2401_v11 }
 0x369   : > { %1117 = vrot.lane.b32.xlu0 %v2601_v61, %s2200_s23  ;;  %1207 = vrot.lane.b32.xlu1 %v2609_v63, %s2199_s22 }
 0x36a   : > { %1994 = vmatprep.subr.mxu1 %v2408_v12 }
 0x36b   : > { %1995 = vmatpush3.msra.mxu1 %v2416_v13 }
 0x36c   : > { %1996 = vmatprep.subr.mxu1 %v2423_v14 }
 0x36d   : > { %1245 = vrot.lane.b32.xlu0 %v2596_v32, %s2205_s21  ;;  %1163 = vrot.lane.b32.xlu1 %v2609_v63, %s2198_s29 }
 0x36e   : > { %1997 = vmatpush3.msra.mxu1 %v2430_v15 }
 0x36f   : > { %1998 = vmatprep.subr.mxu1 %v2437_v16 }
 0x370   : > { %1999 = vmatpush3.msra.mxu1 %v2444_v17 }
 0x371   : > { %1059 = vrot.lane.b32.xlu0 %v2601_v61, %s2201_s6  ;;  %1119 = vrot.lane.b32.xlu1 %v2609_v63, %s2200_s23 }
 0x372   : > { %2000 = vmatprep.subr.mxu1 %v2451_v18 }
 0x373   : > { %2001 = vmatpush3.msra.mxu1 %v2458_v19 }
 0x374   : > { %2002 = vmatprep.subr.mxu1 %v2465_v20 }
 0x375   : > { %1015 = vrot.lane.b32.xlu0 %v2601_v61, %s2202_s19  ;;  %1247 = vrot.lane.b32.xlu1 %v2603_v62, %s2205_s21 }
 0x376   : > { %2003 = vmatpush3.msra.mxu1 %v2472_v21 }
 0x377   : > { %2004 = vmatprep.subr.mxu1 %v2479_v22 }
 0x378   : > { %2005 = vmatpush3.msra.mxu1 %v2486_v23 }
 0x379   : > { %971 = vrot.lane.b32.xlu0 %v2601_v61, %s2203_s20  ;;  %1061 = vrot.lane.b32.xlu1 %v2609_v63, %s2201_s6  ;;  %s432_s6 = sand.u32 1, %s2185_s25  }
 0x37a   : > { %2006 = vmatprep.subr.mxu1 %v2493_v24  ;;  %s1729_s23 = scalar_lea.sflag [#allocation4], %s432_s6 }
 0x37b   : > { %2007 = vmatpush3.msra.mxu1 %v2500_v25 }
 0x37c   : > { %2008 = vmatprep.subr.mxu1 %v2507_v26 }
 0x37d   : > { %926 = vrot.lane.b32.xlu0 %v2601_v61, %s2204_s14  ;;  %1017 = vrot.lane.b32.xlu1 %v2609_v63, %s2202_s19  ;;  %s1806_s19 = sshll.u32 %s432_s6, 4 }
 0x37e   : > { %2009 = vmatpush3.msra.mxu1 %v2517_v27 }
 0x37f   : > { %2010 = vmatprep.subr.mxu1 %v2524_v28 }
 0x380   : > { %2011 = vmatpush3.msra.mxu1 %v2531_v29 }
 0x381   : > { %1249 = vrot.lane.b32.xlu0 %v2601_v61, %s2205_s21  ;;  %973 = vrot.lane.b32.xlu1 %v2609_v63, %s2203_s20  ;;  %s1889_s20 = sshll.u32 %s2298_s28, 8  ;;  %s2206_s28 = smov [#allocation3]  }
 0x382   : > { %2012 = vmatprep.subr.mxu1 %v2540_v31  ;;  %v1180_v31 = vrot.slane %v1834_v46, %v2723_v38  ;;  %s2904_s22 = scalar_lea.hbm %s2952_s13, %s1889_s20 }
 0x383   : > { %2013 = vmatpush3.msra.mxu1 %v2549_v33  ;;  %v1176_v33 = vrot.slane %v1834_v46, %v2721_v37 }
 0x385   : > { %1311 = vperm.xlu0 %2112, %v1308_v45   ;;  %928 = vrot.lane.b32.xlu1 %v2609_v63, %s2204_s14  ;;  %v1224_v45 = vrot.slane %v1837_v39, %v2723_v38  ;;  %v1831_v39 = vld [vmem:[%s2951_s12 + $0xa] sm:$0x3]  ;;  %s434_s14 = scalar_lea.vmem [#allocation3], %s1806_s19  ;;  %s2137_s19 = sshll.u32 %s2206_s28, 4  ;;  %s2138_s19 = int_to_ptr.vmem [resolvable:$false] %s2137_s19 }
 0x386   : > { %s2139_s1 = scalar_lea.vmem %s2138_s19, 512 }
 0x389   : > { %1251 = vrot.lane.b32.xlu1 %v2609_v63, %s2205_s21  ;;  %s1743_s21 = sshll.u32 %s434_s14, 4  ;;  %s1744_s21 = int_to_ptr.vmem [resolvable:$true] %s1743_s21 }
 0x38a   : > { %s2133_s0 = scalar_lea.vmem %s1744_s21, 256  ;;  %p2140_p0 = scmp.lt.s32.totalorder %s1744_s21, %s2138_s19 }
 0x38b   : > { %p2134_p11 = scmp.ne.s32.totalorder %s1744_s21, %s2133_s0  ;;  %p2141_p1 = scmp.lt.s32.totalorder %s2139_s1, %s2133_s0 }
 0x38d   : > { %p2135_p12 = pnand %p2134_p11, %p2315_p5  ;;  %p2142_p2 = por %p2141_p1, %p2140_p0 }
 0x38f   : > { %p2136_p13 = pneg %p2135_p12 }
 0x391   : > { %p2143_p3 = pnand %p2142_p2, %p2136_p13 }
 0x3bb   : > { %v1158_v47 = vpop.permute.xlu0 %1157  ;;  %v1202_v48 = vpop.permute.xlu1 %1201 }
 0x3bf   : > { %v1114_v49 = vpop.permute.xlu0 %1113  ;;  %v1204_v50 = vpop.permute.xlu1 %1203 }
 0x3c3   : > { %v2705_v51 = vpop.permute.xlu0 %1055  ;;  %v1160_v52 = vpop.permute.xlu1 %1159 }
 0x3c7   : > { %v2707_v53 = vpop.permute.xlu0 %1011  ;;  %v1116_v54 = vpop.permute.xlu1 %1115 }
 0x3cb   : > { %v2709_v55 = vpop.permute.xlu0 %967  ;;  %v2711_v56 = vpop.permute.xlu1 %1057 }
 0x3cf   : > { %v2713_v58 = vpop.permute.xlu0 %922  ;;  %v2715_v59 = vpop.permute.xlu1 %1013 }
 0x3d3   : > { %v1206_v35 = vpop.permute.xlu0 %1205  ;;  %v2719_v36 = vpop.permute.xlu1 %969 }
 0x3d4   : > { %v1210_v57 = vsel %vm1209_vm8, %v1202_v48, %v1206_v35  ;;  %v1212_v60 = vsel %vm1209_vm8, %v1206_v35, %v1202_v48 }
 0x3d5   : > { %v1227_v27 = vmul.f32 %v1220_v42, %v1210_v57  ;;  %v1228_v26 = vmul.f32 %v1224_v45, %v1212_v60  ;;  %v1132_v57 = vrot.slane %v1831_v39, %v2721_v37  ;;  %v1136_v60 = vrot.slane %v1831_v39, %v2723_v38 }
 0x3d7   : > { %v1162_v40 = vpop.permute.xlu0 %1161  ;;  %v2729_v41 = vpop.permute.xlu1 %924 }
 0x3d8   : > { %v1166_v48 = vsel %vm1165_vm9, %v1158_v47, %v1162_v40  ;;  %v1168_v35 = vsel %vm1165_vm9, %v1162_v40, %v1158_v47 }
 0x3db   : > { %v1118_v44 = vpop.permute.xlu0 %1117  ;;  %v1208_v34 = vpop.permute.xlu1 %1207 }
 0x3dc   : > { %v1211_v29 = vsel %vm1209_vm8, %v1204_v50, %v1208_v34  ;;  %v1213_v28 = vsel %vm1209_vm8, %v1208_v34, %v1204_v50 }
 0x3dd   : > { %v1229_v25 = vmul.f32 %v1220_v42, %v1211_v29  ;;  %v1230_v24 = vmul.f32 %v1224_v45, %v1213_v28  ;;  %v1183_v42 = vmul.f32 %v1176_v33, %v1166_v48  ;;  %v1184_v45 = vmul.f32 %v1180_v31, %v1168_v35 }
 0x3df   : > { %v1904_v23 = vpack.c.bf16 %v1229_v25, %v1227_v27  ;;  %v2747_v46 = vpop.permute.xlu0 %1245  ;;  %v1164_v34 = vpop.permute.xlu1 %1163  ;;  %v1905_v50 = vpack.c.bf16 %v1230_v24, %v1228_v26  ;;  %v1122_v25 = vsel %vm1121_vm10, %v1114_v49, %v1118_v44  ;;  %v1124_v24 = vsel %vm1121_vm10, %v1118_v44, %v1114_v49  ;;  %v1826_v44 = vld [vmem:[%s2951_s12 + $0x6] sm:$0x3] }
 0x3e0   : > { %v1167_v28 = vsel %vm1165_vm9, %v1160_v52, %v1164_v34  ;;  %v1169_v29 = vsel %vm1165_vm9, %v1164_v34, %v1160_v52 }
 0x3e1   : > { %v1185_v47 = vmul.f32 %v1176_v33, %v1167_v28  ;;  %v1186_v40 = vmul.f32 %v1180_v31, %v1169_v29  ;;  %1414 = vmatprep.subr.bf16.mxu0 %v1905_v50  ;;  %v1139_v33 = vmul.f32 %v1132_v57, %v1122_v25  ;;  %v1140_v31 = vmul.f32 %v1136_v60, %v1124_v24 }
 0x3e2   : > { %1415 = vmatpush1.bf16.msra.mxu0 %v1904_v23  ;;  %v1074_v28 = vrot.slane %v1826_v44, %v2721_v37 }
 0x3e3   : > { %v1902_v26 = vpack.c.bf16 %v1185_v47, %v1183_v42  ;;  %v1060_v27 = vpop.permute.xlu0 %1059  ;;  %v1120_v39 = vpop.permute.xlu1 %1119  ;;  %v1903_v22 = vpack.c.bf16 %v1186_v40, %v1184_v45  ;;  %v2981_v42 = vpack.c.bf16 %v2609_v63, %v2601_v61 }
 0x3e4   : > { %v1123_v21 = vsel %vm1121_vm10, %v1116_v54, %v1120_v39  ;;  %v1125_v52 = vsel %vm1121_vm10, %v1120_v39, %v1116_v54  ;;  %v1078_v54 = vrot.slane %v1826_v44, %v2723_v38 }
 0x3e5   : > { %v1141_v48 = vmul.f32 %v1132_v57, %v1123_v21  ;;  %v1142_v35 = vmul.f32 %v1136_v60, %v1125_v52  ;;  %1416 = vmatprep.subr.bf16.mxu0 %v1903_v22  ;;  %v1823_v21 = vld [vmem:[%s2951_s12 + $0x4] sm:$0x3]  ;;  %v1064_v22 = vsel %vm1063_vm11, %v2705_v51, %v1060_v27  ;;  %v1066_v57 = vsel %vm1063_vm11, %v1060_v27, %v2705_v51 }
 0x3e6   : > { %1417 = vmatpush1.bf16.msra.mxu0 %v1902_v26  ;;  %v1030_v45 = vrot.slane %v1823_v21, %v2721_v37  ;;  %v1034_v47 = vrot.slane %v1823_v21, %v2723_v38  ;;  %v1081_v25 = vmul.f32 %v1074_v28, %v1066_v57  ;;  %v1082_v24 = vmul.f32 %v1078_v54, %v1064_v22  ;;  %v1820_v26 = vld [vmem:[%s2951_s12 + $0x2] sm:$0x3] }
 0x3e7   : > { %v1900_v23 = vpack.c.bf16 %v1141_v48, %v1139_v33  ;;  %v1016_v49 = vpop.permute.xlu0 %1015  ;;  %v2767_v34 = vpop.permute.xlu1 %1247  ;;  %v1901_v50 = vpack.c.bf16 %v1142_v35, %v1140_v31  ;;  %v2982_v52 = vpack.c.bf16 %v2603_v62, %v2596_v32  ;;  %v986_v48 = vrot.slane %v1820_v26, %v2721_v37  ;;  %v937_v62 = vld [vmem:[%s2951_s12] sm:$0x3] }
 0x3e8   : > { %v1020_v27 = vsel %vm1019_vm12, %v2707_v53, %v1016_v49  ;;  %v1022_v39 = vsel %vm1019_vm12, %v1016_v49, %v2707_v53  ;;  %v990_v35 = vrot.slane %v1820_v26, %v2723_v38 }
 0x3e9   : > { %1418 = vmatprep.subr.bf16.mxu0 %v1901_v50  ;;  %v1038_v32 = vmul.f32 %v1034_v47, %v1020_v27 }
 0x3ea   : > { %1419 = vmatpush1.bf16.msra.mxu0 %v1900_v23  ;;  %v1037_v23 = vmul.f32 %v1030_v45, %v1022_v39 }
 0x3eb   : > { %v972_v60 = vpop.permute.xlu0 %971  ;;  %v1062_v29 = vpop.permute.xlu1 %1061  ;;  %1420 = vmatprep.subr.bf16.mxu0 %v2981_v42  ;;  %v946_v42 = vrot.slane %v937_v62, %v2723_v38 }
 0x3ec   : > { %v1065_v40 = vsel %vm1063_vm11, %v2711_v56, %v1062_v29  ;;  %v1067_v51 = vsel %vm1063_vm11, %v1062_v29, %v2711_v56  ;;  %v978_v21 = vsel %vm975_vm13, %v972_v60, %v2709_v55  ;;  %v942_v29 = vrot.slane %v937_v62, %v2721_v37 }
 0x3ed   : > { %v1083_v61 = vmul.f32 %v1074_v28, %v1067_v51  ;;  %v1084_v63 = vmul.f32 %v1078_v54, %v1065_v40  ;;  %v976_v54 = vsel %vm975_vm13, %v2709_v55, %v972_v60  ;;  %v993_v40 = vmul.f32 %v986_v48, %v978_v21  ;;  %v1840_v60 = vld [vmem:[%s2951_s12 + $0x10] sm:$0x3] }
 0x3ee   : > { %1421 = vmatpush1.bf16.msra.mxu0 %v2982_v52  ;;  %v994_v55 = vmul.f32 %v990_v35, %v976_v54  ;;  %v1264_v39 = vrot.slane %v1840_v60, %v2721_v37  ;;  %v1268_v52 = vrot.slane %v1840_v60, %v2723_v38  ;;  %v1843_v21 = vcombine.low %v2663_v43, %v2663_v43 }
 0x3ef   : > { %v1896_v56 = vpack.c.bf16 %v1083_v61, %v1081_v25  ;;  %v1018_v33 = vpop.permute.xlu1 %1017  ;;  %v1897_v31 = vpack.c.bf16 %v1084_v63, %v1082_v24  ;;  %v927_v49 = vpop.permute.xlu0 %926 }
 0x3f0   : > { %v1021_v44 = vsel %vm1019_vm12, %v2715_v59, %v1018_v33  ;;  %v1023_v53 = vsel %vm1019_vm12, %v1018_v33, %v2715_v59  ;;  %v933_v24 = vsel %vm932_vm14, %v2713_v58, %v927_v49  ;;  %v935_v26 = vsel %vm932_vm14, %v927_v49, %v2713_v58 }
 0x3f1   : > { %v1039_v50 = vmul.f32 %v1030_v45, %v1023_v53  ;;  %v1040_v28 = vmul.f32 %v1034_v47, %v1021_v44  ;;  %1422 = vmatprep.subr.bf16.mxu0 %v1897_v31  ;;  %v949_v58 = vmul.f32 %v942_v29, %v935_v26  ;;  %v950_v31 = vmul.f32 %v946_v42, %v933_v24 }
 0x3f2   : > { %1423 = vmatpush1.bf16.msra.mxu0 %v1896_v56 }
 0x3f3   : > { %v1894_v59 = vpack.c.bf16 %v1039_v50, %v1037_v23  ;;  %v974_v22 = vpop.permute.xlu1 %973  ;;  %v1895_v57 = vpack.c.bf16 %v1040_v28, %v1038_v32 }
 0x3f4   : > { %v977_v45 = vsel %vm975_vm13, %v2719_v36, %v974_v22  ;;  %v979_v47 = vsel %vm975_vm13, %v974_v22, %v2719_v36  ;;  %v1250_v36 = vpop.permute.xlu0 %1249 }
 0x3f5   : > { %v995_v51 = vmul.f32 %v986_v48, %v979_v47  ;;  %v996_v25 = vmul.f32 %v990_v35, %v977_v45  ;;  %1424 = vmatprep.subr.bf16.mxu0 %v1895_v57  ;;  %v1254_v44 = vsel %vm1253_vm15, %v2747_v46, %v1250_v36  ;;  %v1256_v37 = vsel %vm1253_vm15, %v1250_v36, %v2747_v46 }
 0x3f6   : > { %1425 = vmatpush1.bf16.msra.mxu0 %v1894_v59  ;;  %v1271_v62 = vmul.f32 %v1264_v39, %v1254_v44  ;;  %v1272_v49 = vmul.f32 %v1268_v52, %v1256_v37 }
 0x3f7   : > { %v1892_v61 = vpack.c.bf16 %v995_v51, %v993_v40  ;;  %v929_v63 = vpop.permute.xlu1 %928  ;;  %v1893_v27 = vpack.c.bf16 %v996_v25, %v994_v55 }
 0x3f8   : > { %v934_v56 = vsel %vm932_vm14, %v2729_v41, %v929_v63  ;;  %v936_v33 = vsel %vm932_vm14, %v929_v63, %v2729_v41 }
 0x3f9   : > { %v951_v48 = vmul.f32 %v942_v29, %v936_v33  ;;  %v952_v35 = vmul.f32 %v946_v42, %v934_v56  ;;  %1426 = vmatprep.subr.bf16.mxu0 %v1893_v27 }
 0x3fa   : > { %1427 = vmatpush1.bf16.msra.mxu0 %v1892_v61 }
 0x3fb   : > { %v1890_v38 = vpack.c.bf16 %v951_v48, %v949_v58  ;;  %v1252_v53 = vpop.permute.xlu1 %1251  ;;  %v1891_v23 = vpack.c.bf16 %v952_v35, %v950_v31 }
 0x3fc   : > { %v1255_v41 = vsel %vm1253_vm15, %v2767_v34, %v1252_v53  ;;  %v1257_v32 = vsel %vm1253_vm15, %v1252_v53, %v2767_v34 }
 0x3fd   : > { %v1273_v50 = vmul.f32 %v1264_v39, %v1255_v41  ;;  %v1274_v28 = vmul.f32 %v1268_v52, %v1257_v32  ;;  %1428 = vmatprep.subr.bf16.mxu0 %v1891_v23 }
 0x3fe   : > { %1429 = vmatpush1.bf16.msra.mxu0 %v1890_v38 }
 0x3ff   : > { %v1906_v54 = vpack.c.bf16 %v1273_v50, %v1271_v62  ;;  %v1907_v46 = vpack.c.bf16 %v1274_v28, %v1272_v49 }
 0x401   : > { %1444 = vmatprep.subr.bf16.mxu0 %v1907_v46 }
 0x402   : > { %1445 = vmatpush2.bf16.msra.mxu0 %v1906_v54 }
 0x403   : > { %2017 = vmatprep.subr.mxu0 %v2328_v0  ;;  %v2983_v0 = vld [vmem:[#allocation6_spill] sm:$0xff] }
 0x405   : > { %1447 = vmatmul.mubr.bf16.vlgmr.msra.gmra.mxu0 %v1843_v21 }
 0x406   : > { %2018 = vmatpush3.msra.mxu0 %v2333_v1  ;;  %v2984_v1 = vld [vmem:[#allocation7_spill] sm:$0xff] }
 0x407   : > { %2019 = vmatprep.subr.mxu0 %v2338_v2  ;;  %v2985_v2 = vld [vmem:[#allocation8_spill] sm:$0xff] }
 0x408   : > { %2020 = vmatpush3.msra.mxu0 %v2345_v3  ;;  %v2986_v3 = vld [vmem:[#allocation9_spill] sm:$0xff] }
 0x409   : > { %2021 = vmatprep.subr.mxu0 %v2352_v4  ;;  %v2987_v4 = vld [vmem:[#allocation10_spill] sm:$0xff] }
 0x40a   : > { %2022 = vmatpush3.msra.mxu0 %v2359_v5  ;;  %v2988_v5 = vld [vmem:[#allocation11_spill] sm:$0xff] }
 0x40b   : > { %2023 = vmatprep.subr.mxu0 %v2366_v6  ;;  %v2989_v6 = vld [vmem:[#allocation12_spill] sm:$0xff] }
 0x40c   : > { %2024 = vmatpush3.msra.mxu0 %v2373_v7  ;;  %v2990_v7 = vld [vmem:[#allocation13_spill] sm:$0xff] }
 0x40d   : > { %2025 = vmatprep.subr.mxu0 %v2380_v8  ;;  %v2991_v8 = vld [vmem:[#allocation14_spill] sm:$0xff] }
 0x40e   : > { %2026 = vmatpush3.msra.mxu0 %v2387_v9  ;;  %v2992_v9 = vld [vmem:[#allocation15_spill] sm:$0xff] }
 0x40f   : > { %2027 = vmatprep.subr.mxu0 %v2394_v10  ;;  %v2993_v10 = vld [vmem:[#allocation16_spill] sm:$0xff] }
 0x410   : > { %2028 = vmatpush3.msra.mxu0 %v2401_v11 }
 0x411   : > { %2029 = vmatprep.subr.mxu0 %v2408_v12 }
 0x412   : > { %2030 = vmatpush3.msra.mxu0 %v2416_v13 }
 0x413   : > { %2031 = vmatprep.subr.mxu0 %v2423_v14 }
 0x414   : > { %2032 = vmatpush3.msra.mxu0 %v2430_v15 }
 0x415   : > { %2033 = vmatprep.subr.mxu0 %v2437_v16  ;;  %v1312_v16 = vpop.permute.xlu0 %1311 }
 0x416   : > { %2034 = vmatpush3.msra.mxu0 %v2444_v17 }
 0x417   : > { %2035 = vmatprep.subr.mxu0 %v2451_v18 }
 0x418   : > { %2036 = vmatpush3.msra.mxu0 %v2458_v19 }
 0x419   : > { %2037 = vmatprep.subr.mxu0 %v2465_v20 }
 0x41a   : > { %2038 = vmatpush3.msra.mxu0 %v2983_v0  ;;  %v1503_v11 = vpop.f32.mrf.mxu1 }
 0x41b   : > { %2039 = vmatprep.subr.mxu0 %v2984_v1 }
 0x41c   : > { %2040 = vmatpush3.msra.mxu0 %v2985_v2  ;;  %v1505_v12 = vpop.f32.mrf.mxu1 }
 0x41d   : > { %2041 = vmatprep.subr.mxu0 %v2986_v3  ;;  %1676 = vmatprep.mubr.f32.mxu0 %v1505_v12 }
 0x41e   : > { %2042 = vmatpush3.msra.mxu0 %v2987_v4  ;;  %v1507_v13 = vpop.f32.mrf.mxu1 }
 0x41f   : > { %2043 = vmatprep.subr.mxu0 %v2988_v5 }
 0x420   : > { %2044 = vmatpush3.msra.mxu0 %v2989_v6  ;;  %v1508_v14 = vpop.f32.mrf.mxu1 }
 0x421   : > { %2045 = vmatprep.subr.mxu0 %v2990_v7 }
 0x422   : > { %2046 = vmatpush3.msra.mxu0 %v2991_v8 }
 0x423   : > { %2047 = vmatprep.subr.mxu0 %v2992_v9 }
 0x424   : > { %2048 = vmatpush3.msra.mxu0 %v2993_v10 }
 0x425   : > { %1677 = vmatmul.mubr.f32.vlgmr.msra.gmra.mxu0 %v1503_v11 }
 0x4c5   : > { %v1448_v15 = vpop.f32.mrf.mxu0 }
 0x4c6   : > { %v1449_v19 = vadd.f32 %v1448_v15, %v1312_v16 }
 0x4c7   : > { %v1450_v17 = vpop.f32.mrf.mxu0 }
 0x4c8   : > { %v1451_v18 = vadd.f32 %v1450_v17, %v1312_v16 }
 0x4c9   : > { %v1452_v20 = vpop.f32.mrf.mxu0 }
 0x4ca   : > { %1606 = vmatprep.mubr.f32.mxu1 %v1451_v18 }
 0x4cb   : > { %v1453_v43 = vpop.f32.mrf.mxu0  ;;  %1607 = vmatmul.mubr.f32.vlgmr.msra.gmra.mxu1 %v1449_v19 }
 0x4e5   : > { %v2049_v30 = vpop.f32.mrf.mxu0 }
 0x4e7   : > { %v2050_v34 = vpop.f32.mrf.mxu0 }
 0x4e8   : > { %v2051_v22 = vadd.f32 %v2050_v34, %v2049_v30 }
 0x4ea   : > { %v1684_v42 = vsel %vm1682_vm0, %v2051_v22, -inf }
 0x58b   : > { %v2014_v59 = vpop.f32.mrf.mxu1 }
 0x58d   : > { %v2015_v57 = vpop.f32.mrf.mxu1 }
 0x58e   : > { %v2016_v29 = vadd.f32 %v2015_v57, %v2014_v59 }
 0x590   : > { %v1683_v45 = vsel %vm1682_vm0, %v2016_v29, -inf }
 0x591   : > { %v1685_v47 = vmax.f32 %v1683_v45, %v1684_v42 }
 0x593   : > { %v1686_v40 = vrot.slane %v1685_v47, 4 }
 0x595   : > { %v1687_v55 = vmax.f32 %v1685_v47, %v1686_v40 }
 0x597   : > { %v1688_v60 = vrot.slane %v1687_v55, 2 }
 0x599   : > { %v1689_v51 = vmax.f32 %v1687_v55, %v1688_v60 }
 0x59b   : > { %v1690_v25 = vrot.slane %v1689_v51, 1 }
 0x59d   : > { %v1691_v24 = vmax.f32 %v1689_v51, %v1690_v25 }
 0x59f   : > { %v1692_v26 = vsub.f32 %v2016_v29, %v1691_v24  ;;  %v1693_v36 = vsub.f32 %v2051_v22, %v1691_v24 }
 0x5a1   : > { %v1694_v61 = vmul.f32 1.442695, %v1692_v26  ;;  %v1696_v63 = vmul.f32 1.442695, %v1693_v36 }
 0x5a3   : > { %2127 = vpow2.f32 %v1694_v61 }
 0x5a4   : > { %2129 = vpow2.f32 %v1696_v63 }
 0x5b0   : > { %v2128_v27 = vpop.eup %2127 }
 0x5b1   : > { %v2130_v39 = vpop.eup %2129  ;;  %v1698_v52 = vsel %vm1682_vm0, %v2128_v27, 0.0 }
 0x5b2   : > { %v1699_v56 = vsel %vm1682_vm0, %v2130_v39, 0.0 }
 0x5b3   : > { %v1700_v33 = vadd.f32 %v1699_v56, %v1698_v52 }
 0x5b5   : > { %v1701_v58 = vrot.slane %v1700_v33, 4 }
 0x5b7   : > { %v1702_v31 = vadd.f32 %v1701_v58, %v1700_v33 }
 0x5b9   : > { %v1703_v48 = vrot.slane %v1702_v31, 2 }
 0x5bb   : > { %v1704_v35 = vadd.f32 %v1703_v48, %v1702_v31 }
 0x5bd   : > { %v1705_v44 = vrot.slane %v1704_v35, 1 }
 0x5bf   : > { %v1706_v37 = vadd.f32 %v1705_v44, %v1704_v35 }
 0x5c1   : > { %2131 = vrcp.f32 %v1706_v37 }
 0x5ce   : > { %v2132_v38 = vpop.eup %2131 }
 0x5cf   : > { %v1709_v53 = vmul.f32 %v2132_v38, %v2130_v39  ;;  %v1708_v23 = vmul.f32 %v2132_v38, %v2128_v27 }
 0x5d1   : > { %1717 = vperm.xlu0 %2112, %v1709_v53   ;;  %1712 = vperm.xlu1 %2113, %v1708_v23  }
 0x64c   : > { %v1718_v41 = vpop.permute.xlu0 %1717  ;;  %v1713_v32 = vpop.permute.xlu1 %1712 }
 0x64d   : > { %v1722_v62 = vmul.f32 %v1718_v41, %v1503_v11  ;;  %v1723_v49 = vmul.f32 %v1718_v41, %v1505_v12  ;;  %v1720_v50 = vmul.f32 %v1713_v32, %v1449_v19  ;;  %v1721_v28 = vmul.f32 %v1713_v32, %v1451_v18 }
 0x64f   : > { %v1724_v54 = vadd.f32 %v1722_v62, %v1720_v50  ;;  %v1725_v46 = vadd.f32 %v1723_v49, %v1721_v28 }
 0x651   : > { %1726 = vst [vmem:[%s434_s14] sm:$0xff] %v1724_v54  ;;  %1727 = vst [vmem:[%s434_s14 + $0x8] sm:$0xff] %v1725_v46 }
 0x652   : > { %2146 = shalt.err (!%p2143_p3)
}
 0x653   : > { %s2147_s20 = scalar_lea.hbm %s2904_s22, 256  ;;  %s2151_s15 = scalar_lea.hbm %s2952_s13, 512 }
 0x654   : > { %p2148_p4 = scmp.ne.s32.totalorder %s2904_s22, %s2147_s20  ;;  %p2152_p9 = scmp.lt.s32.totalorder %s2904_s22, %s2952_s13 }
 0x655   : > { %p2153_p10 = scmp.lt.s32.totalorder %s2151_s15, %s2147_s20 }
 0x656   : > { %p2149_p7 = pnand %p2148_p4, %p2315_p5 }
 0x657   : > { %p2154_p11 = por %p2153_p10, %p2152_p9 }
 0x658   : > { %p2150_p8 = pneg %p2149_p7 }
 0x65a   : > { %p2155_p12 = pnand %p2154_p11, %p2150_p8 }
 0x65c   : > { %2158 = shalt.err (!%p2155_p12)
}
 0x65d   : > { %2062 = dma.vmem_to_hbm [thread:$0]  (%p2315_p5), %s1744_s21, 256, %s2904_s22, %s1729_s23  }
 0x65e PF: > { %p2068_p13 = scmp.ge.s32.totalorder %s2193_s27, 2  ;;  %s1755_s0 = sand.u32 1, %s2181_s24  }
 0x65f   : > { %s1756_s1 = scalar_lea.sflag [#allocation4], %s1755_s0 }
 0x660   : > { %p2065_p0 = pnand %p2068_p13, %p2319_p6 }
 0x662   : > { %p2066_p1 = pneg %p2065_p0 }
 0x664   : > { %2176 = dma.done.wait (%p2066_p1), %s1756_s1, 256  }
 0x665   : > { %2178 = vsyncadd (%p2066_p1), %s1756_s1, 4294967040  ;;  %p23_p2 = scmp.ge.s32.totalorder %s2302_s30, 4   ;;  %s2994_s24 = smov %s2185_s25 }
 0x666   : > { %s2995_s25 = smov %s2189_s26  ;;  %s2996_s26 = smov %s2313_s16 }
 0x667   : > { %s2997_s27 = smov %s2302_s30  ;;  %25 = sbr.rel (!%p23_p2) target bundleno = 6 (0x6), region = 114 }
 0x66c   :  { %1761 = vsyncpa [#allocation4], 1 }
 0x66d   :  { %1763 = vsyncpa [#allocation4 + $0x1], 1 }

</bundles_post_ra>
